<compile_context>
chip_gen: v7x
topology: tpu7x:2x2x1
jax: 0.10.0
libtpu: 0.0.40
codegen_flags: <defaults>
</compile_context>

<pallas_src>
import math
from functools import partial

import jax
import jax.numpy as jnp
from jax.experimental import pallas as pl
from jax.experimental.pallas import tpu as pltpu


def _round_up(n, m):
    return ((n + m - 1) // m) * m


def _vmem_capacity_bytes():
    """Per-core VMEM capacity; conservative 64 MiB (v7x) fallback."""
    try:
        info = pltpu.get_tpu_info()
        cap = getattr(info, "vmem_capacity_bytes", None)
        if cap:
            return int(cap)
    except Exception:
        pass
    return 64 * 1024 * 1024


def _pad_gate_dim(w, h, hp):
    """Pad each of the 4 concatenated gate blocks [i,f,c,o] along the last dim h->hp."""
    if hp == h:
        return w
    pad = [(0, 0)] * (w.ndim - 1) + [(0, hp - h)]
    parts = [jnp.pad(w[..., k * h:(k + 1) * h], pad) for k in range(4)]
    return jnp.concatenate(parts, axis=-1)


# ---------------------------------------------------------------------------
# Pass 1: hoisted input projection  Xproj = x @ U + b   (one big matmul)
# ---------------------------------------------------------------------------
def _input_proj_kernel(x_ref, u_ref, b_ref, out_ref):
    acc = jnp.dot(x_ref[...], u_ref[...], preferred_element_type=jnp.float32)
    out_ref[...] = (acc + b_ref[...]).astype(out_ref.dtype)


def _input_projection(x_2d, u, b_2d, *, row_block, gate_block, out_dtype,
                      vmem_limit_bytes):
    """x_2d: (Sp*Bp, I) rows in (seq, batch) order.  Returns (Sp*Bp, Gp)."""
    rows, inp = x_2d.shape
    gates = u.shape[1]
    return pl.pallas_call(
        _input_proj_kernel,
        out_shape=jax.ShapeDtypeStruct((rows, gates), out_dtype),
        grid_spec=pltpu.PrefetchScalarGridSpec(
            num_scalar_prefetch=0,
            grid=(rows // row_block, gates // gate_block),
            in_specs=[
                pl.BlockSpec((row_block, inp), lambda r, g: (r, 0)),     # x rows
                pl.BlockSpec((inp, gate_block), lambda r, g: (0, g)),    # U slab
                pl.BlockSpec((1, gate_block), lambda r, g: (0, g)),      # bias
            ],
            out_specs=pl.BlockSpec((row_block, gate_block), lambda r, g: (r, g)),
        ),
        compiler_params=pltpu.CompilerParams(
            dimension_semantics=("parallel", "parallel"),
            vmem_limit_bytes=vmem_limit_bytes),
    )(x_2d, u, b_2d)


# ---------------------------------------------------------------------------
# Pass 2: recurrence.  grid = (batch_shards [parallel], time_chunks [arbitrary])
# ---------------------------------------------------------------------------
def _lstm_recurrent_kernel(xproj_ref, v_ref, h0_ref, c0_ref,
                           seq_ref, h_out_ref, c_out_ref,
                           h_scr, c_scr, *,
                           hidden_size, time_block, seq_len, unroll):
    tc = pl.program_id(1)

    @pl.when(tc == 0)
    def _():
        h_scr[...] = h0_ref[...]
        c_scr[...] = c0_ref[...]

    Hp = hidden_size
    v = v_ref[...]                          # (Hp, 4Hp) recurrent weights (resident)
    t_base = tc * time_block
    mask_tail = (seq_len % time_block) != 0  # static: padded tail steps exist?

    def step(t, carry):
        xp_t = xproj_ref[t].astype(jnp.float32)   # (bt, 4Hp) = x_t @ U + b (precomputed)
        h_t = h_scr[...]
        c_t = c_scr[...]
        gates = xp_t + jnp.dot(h_t.astype(v.dtype), v,
                               preferred_element_type=jnp.float32)
        i_t = jax.nn.sigmoid(gates[:, 0 * Hp:1 * Hp])
        f_t = jax.nn.sigmoid(gates[:, 1 * Hp:2 * Hp])
        g_t = jnp.tanh(gates[:, 2 * Hp:3 * Hp])
        o_t = jax.nn.sigmoid(gates[:, 3 * Hp:4 * Hp])
        c_new = f_t * c_t + i_t * g_t
        h_new = o_t * jnp.tanh(c_new)
        if mask_tail:                       # only emitted when S % time_block != 0
            valid = (t_base + t) < seq_len
            h_new = jnp.where(valid, h_new, h_t)
            c_new = jnp.where(valid, c_new, c_t)
        h_scr[...] = h_new
        c_scr[...] = c_new
        seq_ref[t] = h_new.astype(seq_ref.dtype)
        return carry

    jax.lax.fori_loop(0, time_block, step, 0, unroll=unroll)

    # Final-state writes only on the last time chunk (block stays resident).
    @pl.when(tc == pl.num_programs(1) - 1)
    def _():
        h_out_ref[...] = h_scr[...]
        c_out_ref[...] = c_scr[...]


def lstm_forward(x, params, init_states=None, *,
                 compute_dtype=jnp.bfloat16, time_block=None, num_cores=None):
    """x: (batch, seq, input_size).  Returns (hidden_seq, (h_t, c_t)) like the module.

    compute_dtype: MXU operand dtype (default bf16; f32 accumulation, f32 h/c state).
    num_cores:     set to 2 on v7x (2 TensorCores/chip) to shard the batch;
                   default 1 (v5e/v6e) keeps the full batch per grid step.
    """
    U, V, b = params                      # (I, 4H), (H, 4H), (4H,)
    B, S, I = x.shape
    H = V.shape[0]
    out_dtype = x.dtype

    mm_dtype = jnp.dtype(jnp.float32 if compute_dtype is None else compute_dtype)
    xproj_dtype = mm_dtype                # f32 path -> f32 Xproj, bf16 path -> bf16 Xproj

    # ---- padded sizes: lane-dense gates/hidden, sublane-aligned batch ------
    Hp = _round_up(H, 128)
    Gp = 4 * Hp
    Bp = _round_up(B, 8)

    # ---- batch sharding only when >1 TensorCore ----------------------------
    nc = 1 if num_cores is None else int(num_cores)
    if nc >= 2 and Bp % (8 * nc) == 0:
        bt = Bp // nc
    else:
        bt = Bp
    n_b = Bp // bt

    # ---- VMEM-budget-driven time_block + explicit vmem limit ---------------
    xbytes = jnp.dtype(xproj_dtype).itemsize
    obytes = jnp.dtype(out_dtype).itemsize
    wbytes = mm_dtype.itemsize
    vmem_cap = _vmem_capacity_bytes()
    vmem_limit = int(vmem_cap * 0.9)
    budget = int(vmem_cap * 0.6)
    fixed = (2 * Hp * Gp * wbytes          # V (assume double-buffered)
             + 8 * bt * Hp * 4             # h0/c0 in + h/c out (double-buffered)
             + 2 * bt * Hp * 4             # h/c scratch
             + 6 * bt * Gp * 4)            # per-step gate intermediates (slack)
    per_step = 2 * bt * (Gp * xbytes + Hp * obytes)   # Xproj + hidden_seq double-buffers
    if time_block is None:
        time_block = int(min(max(1, (budget - fixed) // per_step), 64, S))
    time_block = max(1, min(int(time_block), S))

    Sp = _round_up(S, time_block)
    n_tc = Sp // time_block

    # Partial unroll keyed on per-step gate footprint (never fully rolled).
    gate_bytes = bt * Gp * 4
    if gate_bytes <= 64 * 1024:
        unroll = min(time_block, 8)
    elif gate_bytes <= 256 * 1024:
        unroll = min(time_block, 4)
    else:
        unroll = min(time_block, 2)

    # ---- pad parameters / states (zero-padded gates keep padded h,c == 0) ---
    U_p = _pad_gate_dim(U, H, Hp)                               # (I, 4Hp)
    V_p = _pad_gate_dim(V, H, Hp)                               # (H, 4Hp)
    if Hp != H:
        V_p = jnp.pad(V_p, ((0, Hp - H), (0, 0)))               # (Hp, 4Hp)
    b_p = _pad_gate_dim(b, H, Hp)                               # (4Hp,)

    u_mm = U_p.astype(mm_dtype)
    v_mm = V_p.astype(mm_dtype)
    b2d = b_p.astype(jnp.float32).reshape(1, Gp)

    if init_states is None:
        h0 = jnp.zeros((B, H), jnp.float32)
        c0 = jnp.zeros((B, H), jnp.float32)
    else:
        h0, c0 = init_states
    h0p = jnp.zeros((Bp, Hp), jnp.float32).at[:B, :H].set(h0.astype(jnp.float32))
    c0p = jnp.zeros((Bp, Hp), jnp.float32).at[:B, :H].set(c0.astype(jnp.float32))

    # ---- Pass 1: one big matmul for the input projection --------------------
    x_sbi = jnp.transpose(x, (1, 0, 2))                         # (S, B, I)
    if (Sp, Bp) != (S, B):
        x_sbi = jnp.pad(x_sbi, ((0, Sp - S), (0, Bp - B), (0, 0)))
    x_2d = x_sbi.astype(mm_dtype).reshape(Sp * Bp, I)

    row_block = time_block * Bp
    if Gp <= 2048:
        gate_block = Gp
    else:
        gate_block = 2048
        while Gp % gate_block:
            gate_block -= 128

    xproj = _input_projection(x_2d, u_mm, b2d,
                              row_block=row_block, gate_block=gate_block,
                              out_dtype=xproj_dtype,
                              vmem_limit_bytes=vmem_limit)
    xproj = xproj.reshape(Sp, Bp, Gp)                           # (Sp, Bp, 4Hp)

    # ---- Pass 2: chunked recurrence -----------------------------------------
    kernel = partial(_lstm_recurrent_kernel,
                     hidden_size=Hp, time_block=time_block,
                     seq_len=S, unroll=unroll)

    seq_pad, h_pad, c_pad = pl.pallas_call(
        kernel,
        out_shape=(
            jax.ShapeDtypeStruct((Sp, Bp, Hp), out_dtype),
            jax.ShapeDtypeStruct((Bp, Hp), jnp.float32),
            jax.ShapeDtypeStruct((Bp, Hp), jnp.float32),
        ),
        grid_spec=pltpu.PrefetchScalarGridSpec(
            num_scalar_prefetch=0,
            grid=(n_b, n_tc),
            in_specs=[
                pl.BlockSpec((time_block, bt, Gp), lambda bb, tc: (tc, bb, 0)),  # Xproj
                pl.BlockSpec((Hp, Gp), lambda bb, tc: (0, 0)),                   # V
                pl.BlockSpec((bt, Hp), lambda bb, tc: (bb, 0)),                  # h0 shard
                pl.BlockSpec((bt, Hp), lambda bb, tc: (bb, 0)),                  # c0 shard
            ],
            out_specs=[
                pl.BlockSpec((time_block, bt, Hp), lambda bb, tc: (tc, bb, 0)),  # hidden_seq
                pl.BlockSpec((bt, Hp), lambda bb, tc: (bb, 0)),                  # final h
                pl.BlockSpec((bt, Hp), lambda bb, tc: (bb, 0)),                  # final c
            ],
            scratch_shapes=[
                pltpu.VMEM((bt, Hp), jnp.float32),    # h carry
                pltpu.VMEM((bt, Hp), jnp.float32),    # c carry
            ],
        ),
        compiler_params=pltpu.CompilerParams(
            dimension_semantics=("parallel", "arbitrary"),
            vmem_limit_bytes=vmem_limit),
    )(xproj, v_mm, h0p, c0p)

    hidden_seq = jnp.transpose(seq_pad[:S, :B, :H], (1, 0, 2))  # (B, S, H)
    return hidden_seq, (h_pad[:B, :H], c_pad[:B, :H])


def init_params(key, input_sz, hidden_sz):
    """Matches nn.Parameter uniform_(-stdv, stdv) init; gates concatenated [i, f, c, o]."""
    stdv = 1.0 / math.sqrt(hidden_sz)
    keys = jax.random.split(key, 12)

    def u(k, shape):
        return jax.random.uniform(k, shape, jnp.float32, -stdv, stdv)

    U = jnp.concatenate([u(keys[i], (input_sz, hidden_sz)) for i in range(4)], axis=1)
    V = jnp.concatenate([u(keys[4 + i], (hidden_sz, hidden_sz)) for i in range(4)], axis=1)
    b = jnp.concatenate([u(keys[8 + i], (hidden_sz,)) for i in range(4)], axis=0)
    return U, V, b


def lstm_reference(x, params, init_states=None):
    """Pure-JAX reference (same math as the PyTorch forward)."""
    U, V, b = params
    B, S, I = x.shape
    H = V.shape[0]
    if init_states is None:
        h0 = jnp.zeros((B, H), jnp.float32)
        c0 = jnp.zeros((B, H), jnp.float32)
    else:
        h0, c0 = init_states

    def step(carry, x_t):
        h, c = carry
        gates = x_t @ U + h @ V + b
        i = jax.nn.sigmoid(gates[:, 0 * H:1 * H])
        f = jax.nn.sigmoid(gates[:, 1 * H:2 * H])
        g = jnp.tanh(gates[:, 2 * H:3 * H])
        o = jax.nn.sigmoid(gates[:, 3 * H:4 * H])
        c_new = f * c + i * g
        h_new = o * jnp.tanh(c_new)
        return (h_new, c_new), h_new

    (h_f, c_f), hs = jax.lax.scan(step, (h0, c0), jnp.transpose(x, (1, 0, 2)))
    return jnp.transpose(hs, (1, 0, 2)), (h_f, c_f)


if __name__ == "__main__":
    input_sz, hidden_sz = 16, 32

    key = jax.random.PRNGKey(0)
    k_x, k_p, k_x2 = jax.random.split(key, 3)
    params = init_params(k_p, input_sz, hidden_sz)

    # --- f32 path: time_block=4 exercises the carry across time chunks and
    #     the H(32->128) / B(4->8) lane/sublane padding ------------------------
    batch, seq = 4, 8
    x = jax.random.normal(k_x, (batch, seq, input_sz), jnp.float32)
    ref_seq, (ref_h, ref_c) = lstm_reference(x, params)

    fwd32 = jax.jit(partial(lstm_forward, compute_dtype=jnp.float32, time_block=4))
    hidden_seq, (h_t, c_t) = fwd32(x, params)
    jax.block_until_ready((hidden_seq, h_t, c_t))

    assert hidden_seq.shape == (batch, seq, hidden_sz)
    assert h_t.shape == (batch, hidden_sz) and c_t.shape == (batch, hidden_sz)
    assert jnp.allclose(hidden_seq, ref_seq, atol=1e-4, rtol=1e-4)
    assert jnp.allclose(h_t, ref_h, atol=1e-4, rtol=1e-4)
    assert jnp.allclose(c_t, ref_c, atol=1e-4, rtol=1e-4)

    # --- awkward sizes: batch=3, seq=5 with time_block=4 exercises the padded
    #     sequence tail masking and non-multiple-of-8 batch padding ------------
    x_odd = jax.random.normal(k_x2, (3, 5, input_sz), jnp.float32)
    ref_seq2, (ref_h2, ref_c2) = lstm_reference(x_odd, params)
    fwd_odd = jax.jit(partial(lstm_forward, compute_dtype=jnp.float32, time_block=4))
    seq2, (h2, c2) = fwd_odd(x_odd, params)
    jax.block_until_ready((seq2, h2, c2))
    assert seq2.shape == (3, 5, hidden_sz)
    assert jnp.allclose(seq2, ref_seq2, atol=1e-4, rtol=1e-4)
    assert jnp.allclose(h2, ref_h2, atol=1e-4, rtol=1e-4)
    assert jnp.allclose(c2, ref_c2, atol=1e-4, rtol=1e-4)

    # --- default path: bf16 MXU operands + bf16 Xproj, f32 accumulation and
    #     f32 recurrent state ---------------------------------------------------
    fwd_bf16 = jax.jit(lstm_forward)
    seq16, (h16, c16) = fwd_bf16(x, params)
    jax.block_until_ready((seq16, h16, c16))
    assert float(jnp.max(jnp.abs(seq16 - ref_seq))) < 0.1
    assert float(jnp.max(jnp.abs(c16 - ref_c))) < 0.2

    print("KERNEL_OK")
</pallas_src>

<mosaic_0001>
module attributes {stable_mosaic.version = 11 : i64} {
  func.func @_input_proj_kernel(%arg0: i32, %arg1: i32, %arg2: memref<32x16xf32, #tpu.memory_space<vmem>>, %arg3: memref<16x512xf32, #tpu.memory_space<vmem>>, %arg4: memref<1x512xf32, #tpu.memory_space<vmem>>, %arg5: memref<32x512xf32, #tpu.memory_space<vmem>>) attributes {dimension_semantics = [#tpu.dimension_semantics<parallel>, #tpu.dimension_semantics<parallel>], iteration_bounds = array<i64: 2, 1>, scalar_prefetch = 0 : i64, scratch_operands = 0 : i64, tpu.core_type = #tpu.core_type<tc>, window_params = [{transform_indices = @transform_0, window_bounds = array<i64: 32, 16>}, {transform_indices = @transform_1, window_bounds = array<i64: 16, 512>}, {transform_indices = @transform_2, window_bounds = array<i64: 1, 512>}, {transform_indices = @transform_3, window_bounds = array<i64: 32, 512>}]} {
    %c0 = arith.constant 0 : index
    %c0_0 = arith.constant 0 : index
    %0 = vector.load %arg2[%c0, %c0_0] : memref<32x16xf32, #tpu.memory_space<vmem>>, vector<32x16xf32>
    %c0_1 = arith.constant 0 : index
    %c0_2 = arith.constant 0 : index
    %1 = vector.load %arg3[%c0_1, %c0_2] : memref<16x512xf32, #tpu.memory_space<vmem>>, vector<16x512xf32>
    %cst = arith.constant dense<0.000000e+00> : vector<32x512xf32>
    %2 = tpu.matmul %0, %1, %cst {dimension_numbers = #tpu.dot_dimension_numbers<[1], [0], [0], [1], [0, 0, 1, 1], [], []>} : vector<32x16xf32>, vector<16x512xf32>, vector<32x512xf32> -> vector<32x512xf32>
    %c0_3 = arith.constant 0 : index
    %c0_4 = arith.constant 0 : index
    %3 = vector.load %arg4[%c0_3, %c0_4] : memref<1x512xf32, #tpu.memory_space<vmem>>, vector<1x512xf32>
    %4 = vector.broadcast %3 : vector<1x512xf32> to vector<32x512xf32>
    %5 = arith.addf %2, %4 : vector<32x512xf32>
    %c0_5 = arith.constant 0 : index
    %c0_6 = arith.constant 0 : index
    %6 = vector.load %arg5[%c0_5, %c0_6] : memref<32x512xf32, #tpu.memory_space<vmem>>, vector<32x512xf32>
    tpu.vector_store %arg5[%c0_5, %c0_6], %5 {strides = array<i32>} : memref<32x512xf32, #tpu.memory_space<vmem>>, vector<32x512xf32>,
    return
  }
  func.func @transform_0(%arg0: i32, %arg1: i32) -> (i32, i32) {
    %c0_i32 = arith.constant 0 : i32
    %c0_i32_0 = arith.constant 0 : i32
    return %arg0, %c0_i32 : i32, i32
  }
  func.func @transform_1(%arg0: i32, %arg1: i32) -> (i32, i32) {
    %c0_i32 = arith.constant 0 : i32
    %c0_i32_0 = arith.constant 0 : i32
    return %c0_i32, %arg1 : i32, i32
  }
  func.func @transform_2(%arg0: i32, %arg1: i32) -> (i32, i32) {
    %c0_i32 = arith.constant 0 : i32
    %c0_i32_0 = arith.constant 0 : i32
    return %c0_i32, %arg1 : i32, i32
  }
  func.func @transform_3(%arg0: i32, %arg1: i32) -> (i32, i32) {
    %c0_i32 = arith.constant 0 : i32
    return %arg0, %arg1 : i32, i32
  }
}

module attributes {stable_mosaic.version = 11 : i64} {
  func.func @_lstm_recurrent_kernel(%arg0: i32, %arg1: i32, %arg2: memref<4x8x512xf32, #tpu.memory_space<vmem>>, %arg3: memref<128x512xf32, #tpu.memory_space<vmem>>, %arg4: memref<8x128xf32, #tpu.memory_space<vmem>>, %arg5: memref<8x128xf32, #tpu.memory_space<vmem>>, %arg6: memref<4x8x128xf32, #tpu.memory_space<vmem>>, %arg7: memref<8x128xf32, #tpu.memory_space<vmem>>, %arg8: memref<8x128xf32, #tpu.memory_space<vmem>>, %arg9: memref<8x128xf32, #tpu.memory_space<vmem>>, %arg10: memref<8x128xf32, #tpu.memory_space<vmem>>) attributes {dimension_semantics = [#tpu.dimension_semantics<parallel>, #tpu.dimension_semantics<arbitrary>], iteration_bounds = array<i64: 1, 2>, scalar_prefetch = 0 : i64, scratch_operands = 2 : i64, tpu.core_type = #tpu.core_type<tc>, window_params = [{transform_indices = @transform_0, window_bounds = array<i64: 4, 8, 512>}, {pipeline_mode = #tpu.pipeline_mode<synchronous>, transform_indices = @transform_1, window_bounds = array<i64: 128, 512>}, {transform_indices = @transform_2, window_bounds = array<i64: 8, 128>}, {transform_indices = @transform_3, window_bounds = array<i64: 8, 128>}, {transform_indices = @transform_4, window_bounds = array<i64: 4, 8, 128>}, {transform_indices = @transform_5, window_bounds = array<i64: 8, 128>}, {transform_indices = @transform_6, window_bounds = array<i64: 8, 128>}]} {
    %c0_i32 = arith.constant 0 : i32
    %0 = arith.cmpi eq, %arg1, %c0_i32 : i32
    %1 = arith.extui %0 : i1 to i32
    %c0_i32_0 = arith.constant 0 : i32
    %2 = arith.cmpi ne, %1, %c0_i32_0 : i32
    scf.if %2 {
      %c0_68 = arith.constant 0 : index
      %c0_69 = arith.constant 0 : index
      %159 = vector.load %arg4[%c0_68, %c0_69] : memref<8x128xf32, #tpu.memory_space<vmem>>, vector<8x128xf32>
      %c0_70 = arith.constant 0 : index
      %c0_71 = arith.constant 0 : index
      %160 = vector.load %arg9[%c0_70, %c0_71] : memref<8x128xf32, #tpu.memory_space<vmem>>, vector<8x128xf32>
      tpu.vector_store %arg9[%c0_70, %c0_71], %159 {strides = array<i32>} : memref<8x128xf32, #tpu.memory_space<vmem>>, vector<8x128xf32>,
      %c0_72 = arith.constant 0 : index
      %c0_73 = arith.constant 0 : index
      %161 = vector.load %arg5[%c0_72, %c0_73] : memref<8x128xf32, #tpu.memory_space<vmem>>, vector<8x128xf32>
      %c0_74 = arith.constant 0 : index
      %c0_75 = arith.constant 0 : index
      %162 = vector.load %arg10[%c0_74, %c0_75] : memref<8x128xf32, #tpu.memory_space<vmem>>, vector<8x128xf32>
      tpu.vector_store %arg10[%c0_74, %c0_75], %161 {strides = array<i32>} : memref<8x128xf32, #tpu.memory_space<vmem>>, vector<8x128xf32>,
    } else {
    }
    %c0 = arith.constant 0 : index
    %c0_1 = arith.constant 0 : index
    %3 = vector.load %arg3[%c0, %c0_1] : memref<128x512xf32, #tpu.memory_space<vmem>>, vector<128x512xf32>
    %c0_i32_2 = arith.constant 0 : i32
    %4 = arith.index_cast %c0_i32_2 : i32 to index
    %c0_3 = arith.constant 0 : index
    %c0_4 = arith.constant 0 : index
    %5 = vector.load %arg2[%4, %c0_3, %c0_4] : memref<4x8x512xf32, #tpu.memory_space<vmem>>, vector<1x8x512xf32>
    %6 = vector.shape_cast %5 : vector<1x8x512xf32> to vector<8x512xf32>
    %c0_5 = arith.constant 0 : index
    %c0_6 = arith.constant 0 : index
    %7 = vector.load %arg9[%c0_5, %c0_6] : memref<8x128xf32, #tpu.memory_space<vmem>>, vector<8x128xf32>
    %c0_7 = arith.constant 0 : index
    %c0_8 = arith.constant 0 : index
    %8 = vector.load %arg10[%c0_7, %c0_8] : memref<8x128xf32, #tpu.memory_space<vmem>>, vector<8x128xf32>
    %cst = arith.constant dense<0.000000e+00> : vector<8x512xf32>
    %9 = tpu.matmul %7, %3, %cst {dimension_numbers = #tpu.dot_dimension_numbers<[1], [0], [0], [1], [0, 0, 1, 1], [], []>} : vector<8x128xf32>, vector<128x512xf32>, vector<8x512xf32> -> vector<8x512xf32>
    %10 = arith.addf %6, %9 : vector<8x512xf32>
    %11 = vector.extract_strided_slice %10 {offsets = [0, 0], sizes = [8, 128], strides = [1, 1]} : vector<8x512xf32> to vector<8x128xf32>
    %12 = arith.negf %11 : vector<8x128xf32>
    %13 = math.exp %12 : vector<8x128xf32>
    %cst_9 = arith.constant 1.000000e+00 : f32
    %14 = vector.broadcast %cst_9 : f32 to vector<8x128xf32>
    %15 = arith.addf %14, %13 : vector<8x128xf32>
    %16 = arith.divf %14, %15 : vector<8x128xf32>
    %17 = vector.extract_strided_slice %10 {offsets = [0, 128], sizes = [8, 128], strides = [1, 1]} : vector<8x512xf32> to vector<8x128xf32>
    %18 = arith.negf %17 : vector<8x128xf32>
    %19 = math.exp %18 : vector<8x128xf32>
    %cst_10 = arith.constant 1.000000e+00 : f32
    %20 = vector.broadcast %cst_10 : f32 to vector<8x128xf32>
    %21 = arith.addf %20, %19 : vector<8x128xf32>
    %22 = arith.divf %20, %21 : vector<8x128xf32>
    %23 = vector.extract_strided_slice %10 {offsets = [0, 256], sizes = [8, 128], strides = [1, 1]} : vector<8x512xf32> to vector<8x128xf32>
    %24 = math.tanh %23 : vector<8x128xf32>
    %25 = vector.extract_strided_slice %10 {offsets = [0, 384], sizes = [8, 128], strides = [1, 1]} : vector<8x512xf32> to vector<8x128xf32>
    %26 = arith.negf %25 : vector<8x128xf32>
    %27 = math.exp %26 : vector<8x128xf32>
    %cst_11 = arith.constant 1.000000e+00 : f32
    %28 = vector.broadcast %cst_11 : f32 to vector<8x128xf32>
    %29 = arith.addf %28, %27 : vector<8x128xf32>
    %30 = arith.divf %28, %29 : vector<8x128xf32>
    %31 = arith.mulf %22, %8 : vector<8x128xf32>
    %32 = arith.mulf %16, %24 : vector<8x128xf32>
    %33 = arith.addf %31, %32 : vector<8x128xf32>
    %34 = math.tanh %33 : vector<8x128xf32>
    %35 = arith.mulf %30, %34 : vector<8x128xf32>
    %c0_12 = arith.constant 0 : index
    %c0_13 = arith.constant 0 : index
    %36 = vector.load %arg9[%c0_12, %c0_13] : memref<8x128xf32, #tpu.memory_space<vmem>>, vector<8x128xf32>
    tpu.vector_store %arg9[%c0_12, %c0_13], %35 {strides = array<i32>} : memref<8x128xf32, #tpu.memory_space<vmem>>, vector<8x128xf32>,
    %c0_14 = arith.constant 0 : index
    %c0_15 = arith.constant 0 : index
    %37 = vector.load %arg10[%c0_14, %c0_15] : memref<8x128xf32, #tpu.memory_space<vmem>>, vector<8x128xf32>
    tpu.vector_store %arg10[%c0_14, %c0_15], %33 {strides = array<i32>} : memref<8x128xf32, #tpu.memory_space<vmem>>, vector<8x128xf32>,
    %38 = arith.index_cast %c0_i32_2 : i32 to index
    %c0_16 = arith.constant 0 : index
    %c0_17 = arith.constant 0 : index
    %39 = vector.load %arg6[%38, %c0_16, %c0_17] : memref<4x8x128xf32, #tpu.memory_space<vmem>>, vector<1x8x128xf32>
    %40 = vector.shape_cast %39 : vector<1x8x128xf32> to vector<8x128xf32>
    %41 = vector.shape_cast %35 : vector<8x128xf32> to vector<1x8x128xf32>
    tpu.vector_store %arg6[%38, %c0_16, %c0_17], %41 {strides = array<i32>} : memref<4x8x128xf32, #tpu.memory_space<vmem>>, vector<1x8x128xf32>,
    %c1_i32 = arith.constant 1 : i32
    %42 = arith.index_cast %c1_i32 : i32 to index
    %c0_18 = arith.constant 0 : index
    %c0_19 = arith.constant 0 : index
    %43 = vector.load %arg2[%42, %c0_18, %c0_19] : memref<4x8x512xf32, #tpu.memory_space<vmem>>, vector<1x8x512xf32>
    %44 = vector.shape_cast %43 : vector<1x8x512xf32> to vector<8x512xf32>
    %c0_20 = arith.constant 0 : index
    %c0_21 = arith.constant 0 : index
    %45 = vector.load %arg9[%c0_20, %c0_21] : memref<8x128xf32, #tpu.memory_space<vmem>>, vector<8x128xf32>
    %c0_22 = arith.constant 0 : index
    %c0_23 = arith.constant 0 : index
    %46 = vector.load %arg10[%c0_22, %c0_23] : memref<8x128xf32, #tpu.memory_space<vmem>>, vector<8x128xf32>
    %cst_24 = arith.constant dense<0.000000e+00> : vector<8x512xf32>
    %47 = tpu.matmul %45, %3, %cst_24 {dimension_numbers = #tpu.dot_dimension_numbers<[1], [0], [0], [1], [0, 0, 1, 1], [], []>} : vector<8x128xf32>, vector<128x512xf32>, vector<8x512xf32> -> vector<8x512xf32>
    %48 = arith.addf %44, %47 : vector<8x512xf32>
    %49 = vector.extract_strided_slice %48 {offsets = [0, 0], sizes = [8, 128], strides = [1, 1]} : vector<8x512xf32> to vector<8x128xf32>
    %50 = arith.negf %49 : vector<8x128xf32>
    %51 = math.exp %50 : vector<8x128xf32>
    %cst_25 = arith.constant 1.000000e+00 : f32
    %52 = vector.broadcast %cst_25 : f32 to vector<8x128xf32>
    %53 = arith.addf %52, %51 : vector<8x128xf32>
    %54 = arith.divf %52, %53 : vector<8x128xf32>
    %55 = vector.extract_strided_slice %48 {offsets = [0, 128], sizes = [8, 128], strides = [1, 1]} : vector<8x512xf32> to vector<8x128xf32>
    %56 = arith.negf %55 : vector<8x128xf32>
    %57 = math.exp %56 : vector<8x128xf32>
    %cst_26 = arith.constant 1.000000e+00 : f32
    %58 = vector.broadcast %cst_26 : f32 to vector<8x128xf32>
    %59 = arith.addf %58, %57 : vector<8x128xf32>
    %60 = arith.divf %58, %59 : vector<8x128xf32>
    %61 = vector.extract_strided_slice %48 {offsets = [0, 256], sizes = [8, 128], strides = [1, 1]} : vector<8x512xf32> to vector<8x128xf32>
    %62 = math.tanh %61 : vector<8x128xf32>
    %63 = vector.extract_strided_slice %48 {offsets = [0, 384], sizes = [8, 128], strides = [1, 1]} : vector<8x512xf32> to vector<8x128xf32>
    %64 = arith.negf %63 : vector<8x128xf32>
    %65 = math.exp %64 : vector<8x128xf32>
    %cst_27 = arith.constant 1.000000e+00 : f32
    %66 = vector.broadcast %cst_27 : f32 to vector<8x128xf32>
    %67 = arith.addf %66, %65 : vector<8x128xf32>
    %68 = arith.divf %66, %67 : vector<8x128xf32>
    %69 = arith.mulf %60, %46 : vector<8x128xf32>
    %70 = arith.mulf %54, %62 : vector<8x128xf32>
    %71 = arith.addf %69, %70 : vector<8x128xf32>
    %72 = math.tanh %71 : vector<8x128xf32>
    %73 = arith.mulf %68, %72 : vector<8x128xf32>
    %c0_28 = arith.constant 0 : index
    %c0_29 = arith.constant 0 : index
    %74 = vector.load %arg9[%c0_28, %c0_29] : memref<8x128xf32, #tpu.memory_space<vmem>>, vector<8x128xf32>
    tpu.vector_store %arg9[%c0_28, %c0_29], %73 {strides = array<i32>} : memref<8x128xf32, #tpu.memory_space<vmem>>, vector<8x128xf32>,
    %c0_30 = arith.constant 0 : index
    %c0_31 = arith.constant 0 : index
    %75 = vector.load %arg10[%c0_30, %c0_31] : memref<8x128xf32, #tpu.memory_space<vmem>>, vector<8x128xf32>
    tpu.vector_store %arg10[%c0_30, %c0_31], %71 {strides = array<i32>} : memref<8x128xf32, #tpu.memory_space<vmem>>, vector<8x128xf32>,
    %76 = arith.index_cast %c1_i32 : i32 to index
    %c0_32 = arith.constant 0 : index
    %c0_33 = arith.constant 0 : index
    %77 = vector.load %arg6[%76, %c0_32, %c0_33] : memref<4x8x128xf32, #tpu.memory_space<vmem>>, vector<1x8x128xf32>
    %78 = vector.shape_cast %77 : vector<1x8x128xf32> to vector<8x128xf32>
    %79 = vector.shape_cast %73 : vector<8x128xf32> to vector<1x8x128xf32>
    tpu.vector_store %arg6[%76, %c0_32, %c0_33], %79 {strides = array<i32>} : memref<4x8x128xf32, #tpu.memory_space<vmem>>, vector<1x8x128xf32>,
    %c2_i32 = arith.constant 2 : i32
    %80 = arith.index_cast %c2_i32 : i32 to index
    %c0_34 = arith.constant 0 : index
    %c0_35 = arith.constant 0 : index
    %81 = vector.load %arg2[%80, %c0_34, %c0_35] : memref<4x8x512xf32, #tpu.memory_space<vmem>>, vector<1x8x512xf32>
    %82 = vector.shape_cast %81 : vector<1x8x512xf32> to vector<8x512xf32>
    %c0_36 = arith.constant 0 : index
    %c0_37 = arith.constant 0 : index
    %83 = vector.load %arg9[%c0_36, %c0_37] : memref<8x128xf32, #tpu.memory_space<vmem>>, vector<8x128xf32>
    %c0_38 = arith.constant 0 : index
    %c0_39 = arith.constant 0 : index
    %84 = vector.load %arg10[%c0_38, %c0_39] : memref<8x128xf32, #tpu.memory_space<vmem>>, vector<8x128xf32>
    %cst_40 = arith.constant dense<0.000000e+00> : vector<8x512xf32>
    %85 = tpu.matmul %83, %3, %cst_40 {dimension_numbers = #tpu.dot_dimension_numbers<[1], [0], [0], [1], [0, 0, 1, 1], [], []>} : vector<8x128xf32>, vector<128x512xf32>, vector<8x512xf32> -> vector<8x512xf32>
    %86 = arith.addf %82, %85 : vector<8x512xf32>
    %87 = vector.extract_strided_slice %86 {offsets = [0, 0], sizes = [8, 128], strides = [1, 1]} : vector<8x512xf32> to vector<8x128xf32>
    %88 = arith.negf %87 : vector<8x128xf32>
    %89 = math.exp %88 : vector<8x128xf32>
    %cst_41 = arith.constant 1.000000e+00 : f32
    %90 = vector.broadcast %cst_41 : f32 to vector<8x128xf32>
    %91 = arith.addf %90, %89 : vector<8x128xf32>
    %92 = arith.divf %90, %91 : vector<8x128xf32>
    %93 = vector.extract_strided_slice %86 {offsets = [0, 128], sizes = [8, 128], strides = [1, 1]} : vector<8x512xf32> to vector<8x128xf32>
    %94 = arith.negf %93 : vector<8x128xf32>
    %95 = math.exp %94 : vector<8x128xf32>
    %cst_42 = arith.constant 1.000000e+00 : f32
    %96 = vector.broadcast %cst_42 : f32 to vector<8x128xf32>
    %97 = arith.addf %96, %95 : vector<8x128xf32>
    %98 = arith.divf %96, %97 : vector<8x128xf32>
    %99 = vector.extract_strided_slice %86 {offsets = [0, 256], sizes = [8, 128], strides = [1, 1]} : vector<8x512xf32> to vector<8x128xf32>
    %100 = math.tanh %99 : vector<8x128xf32>
    %101 = vector.extract_strided_slice %86 {offsets = [0, 384], sizes = [8, 128], strides = [1, 1]} : vector<8x512xf32> to vector<8x128xf32>
    %102 = arith.negf %101 : vector<8x128xf32>
    %103 = math.exp %102 : vector<8x128xf32>
    %cst_43 = arith.constant 1.000000e+00 : f32
    %104 = vector.broadcast %cst_43 : f32 to vector<8x128xf32>
    %105 = arith.addf %104, %103 : vector<8x128xf32>
    %106 = arith.divf %104, %105 : vector<8x128xf32>
    %107 = arith.mulf %98, %84 : vector<8x128xf32>
    %108 = arith.mulf %92, %100 : vector<8x128xf32>
    %109 = arith.addf %107, %108 : vector<8x128xf32>
    %110 = math.tanh %109 : vector<8x128xf32>
    %111 = arith.mulf %106, %110 : vector<8x128xf32>
    %c0_44 = arith.constant 0 : index
    %c0_45 = arith.constant 0 : index
    %112 = vector.load %arg9[%c0_44, %c0_45] : memref<8x128xf32, #tpu.memory_space<vmem>>, vector<8x128xf32>
    tpu.vector_store %arg9[%c0_44, %c0_45], %111 {strides = array<i32>} : memref<8x128xf32, #tpu.memory_space<vmem>>, vector<8x128xf32>,
    %c0_46 = arith.constant 0 : index
    %c0_47 = arith.constant 0 : index
    %113 = vector.load %arg10[%c0_46, %c0_47] : memref<8x128xf32, #tpu.memory_space<vmem>>, vector<8x128xf32>
    tpu.vector_store %arg10[%c0_46, %c0_47], %109 {strides = array<i32>} : memref<8x128xf32, #tpu.memory_space<vmem>>, vector<8x128xf32>,
    %114 = arith.index_cast %c2_i32 : i32 to index
    %c0_48 = arith.constant 0 : index
    %c0_49 = arith.constant 0 : index
    %115 = vector.load %arg6[%114, %c0_48, %c0_49] : memref<4x8x128xf32, #tpu.memory_space<vmem>>, vector<1x8x128xf32>
    %116 = vector.shape_cast %115 : vector<1x8x128xf32> to vector<8x128xf32>
    %117 = vector.shape_cast %111 : vector<8x128xf32> to vector<1x8x128xf32>
    tpu.vector_store %arg6[%114, %c0_48, %c0_49], %117 {strides = array<i32>} : memref<4x8x128xf32, #tpu.memory_space<vmem>>, vector<1x8x128xf32>,
    %c3_i32 = arith.constant 3 : i32
    %118 = arith.index_cast %c3_i32 : i32 to index
    %c0_50 = arith.constant 0 : index
    %c0_51 = arith.constant 0 : index
    %119 = vector.load %arg2[%118, %c0_50, %c0_51] : memref<4x8x512xf32, #tpu.memory_space<vmem>>, vector<1x8x512xf32>
    %120 = vector.shape_cast %119 : vector<1x8x512xf32> to vector<8x512xf32>
    %c0_52 = arith.constant 0 : index
    %c0_53 = arith.constant 0 : index
    %121 = vector.load %arg9[%c0_52, %c0_53] : memref<8x128xf32, #tpu.memory_space<vmem>>, vector<8x128xf32>
    %c0_54 = arith.constant 0 : index
    %c0_55 = arith.constant 0 : index
    %122 = vector.load %arg10[%c0_54, %c0_55] : memref<8x128xf32, #tpu.memory_space<vmem>>, vector<8x128xf32>
    %cst_56 = arith.constant dense<0.000000e+00> : vector<8x512xf32>
    %123 = tpu.matmul %121, %3, %cst_56 {dimension_numbers = #tpu.dot_dimension_numbers<[1], [0], [0], [1], [0, 0, 1, 1], [], []>} : vector<8x128xf32>, vector<128x512xf32>, vector<8x512xf32> -> vector<8x512xf32>
    %124 = arith.addf %120, %123 : vector<8x512xf32>
    %125 = vector.extract_strided_slice %124 {offsets = [0, 0], sizes = [8, 128], strides = [1, 1]} : vector<8x512xf32> to vector<8x128xf32>
    %126 = arith.negf %125 : vector<8x128xf32>
    %127 = math.exp %126 : vector<8x128xf32>
    %cst_57 = arith.constant 1.000000e+00 : f32
    %128 = vector.broadcast %cst_57 : f32 to vector<8x128xf32>
    %129 = arith.addf %128, %127 : vector<8x128xf32>
    %130 = arith.divf %128, %129 : vector<8x128xf32>
    %131 = vector.extract_strided_slice %124 {offsets = [0, 128], sizes = [8, 128], strides = [1, 1]} : vector<8x512xf32> to vector<8x128xf32>
    %132 = arith.negf %131 : vector<8x128xf32>
    %133 = math.exp %132 : vector<8x128xf32>
    %cst_58 = arith.constant 1.000000e+00 : f32
    %134 = vector.broadcast %cst_58 : f32 to vector<8x128xf32>
    %135 = arith.addf %134, %133 : vector<8x128xf32>
    %136 = arith.divf %134, %135 : vector<8x128xf32>
    %137 = vector.extract_strided_slice %124 {offsets = [0, 256], sizes = [8, 128], strides = [1, 1]} : vector<8x512xf32> to vector<8x128xf32>
    %138 = math.tanh %137 : vector<8x128xf32>
    %139 = vector.extract_strided_slice %124 {offsets = [0, 384], sizes = [8, 128], strides = [1, 1]} : vector<8x512xf32> to vector<8x128xf32>
    %140 = arith.negf %139 : vector<8x128xf32>
    %141 = math.exp %140 : vector<8x128xf32>
    %cst_59 = arith.constant 1.000000e+00 : f32
    %142 = vector.broadcast %cst_59 : f32 to vector<8x128xf32>
    %143 = arith.addf %142, %141 : vector<8x128xf32>
    %144 = arith.divf %142, %143 : vector<8x128xf32>
    %145 = arith.mulf %136, %122 : vector<8x128xf32>
    %146 = arith.mulf %130, %138 : vector<8x128xf32>
    %147 = arith.addf %145, %146 : vector<8x128xf32>
    %148 = math.tanh %147 : vector<8x128xf32>
    %149 = arith.mulf %144, %148 : vector<8x128xf32>
    %c0_60 = arith.constant 0 : index
    %c0_61 = arith.constant 0 : index
    %150 = vector.load %arg9[%c0_60, %c0_61] : memref<8x128xf32, #tpu.memory_space<vmem>>, vector<8x128xf32>
    tpu.vector_store %arg9[%c0_60, %c0_61], %149 {strides = array<i32>} : memref<8x128xf32, #tpu.memory_space<vmem>>, vector<8x128xf32>,
    %c0_62 = arith.constant 0 : index
    %c0_63 = arith.constant 0 : index
    %151 = vector.load %arg10[%c0_62, %c0_63] : memref<8x128xf32, #tpu.memory_space<vmem>>, vector<8x128xf32>
    tpu.vector_store %arg10[%c0_62, %c0_63], %147 {strides = array<i32>} : memref<8x128xf32, #tpu.memory_space<vmem>>, vector<8x128xf32>,
    %152 = arith.index_cast %c3_i32 : i32 to index
    %c0_64 = arith.constant 0 : index
    %c0_65 = arith.constant 0 : index
    %153 = vector.load %arg6[%152, %c0_64, %c0_65] : memref<4x8x128xf32, #tpu.memory_space<vmem>>, vector<1x8x128xf32>
    %154 = vector.shape_cast %153 : vector<1x8x128xf32> to vector<8x128xf32>
    %155 = vector.shape_cast %149 : vector<8x128xf32> to vector<1x8x128xf32>
    tpu.vector_store %arg6[%152, %c0_64, %c0_65], %155 {strides = array<i32>} : memref<4x8x128xf32, #tpu.memory_space<vmem>>, vector<1x8x128xf32>,
    %c4_i32 = arith.constant 4 : i32
    %c1_i32_66 = arith.constant 1 : i32
    %156 = arith.cmpi eq, %arg1, %c1_i32_66 : i32
    %157 = arith.extui %156 : i1 to i32
    %c0_i32_67 = arith.constant 0 : i32
    %158 = arith.cmpi ne, %157, %c0_i32_67 : i32
    scf.if %158 {
      %c0_68 = arith.constant 0 : index
      %c0_69 = arith.constant 0 : index
      %159 = vector.load %arg9[%c0_68, %c0_69] : memref<8x128xf32, #tpu.memory_space<vmem>>, vector<8x128xf32>
      %c0_70 = arith.constant 0 : index
      %c0_71 = arith.constant 0 : index
      %160 = vector.load %arg7[%c0_70, %c0_71] : memref<8x128xf32, #tpu.memory_space<vmem>>, vector<8x128xf32>
      tpu.vector_store %arg7[%c0_70, %c0_71], %159 {strides = array<i32>} : memref<8x128xf32, #tpu.memory_space<vmem>>, vector<8x128xf32>,
      %c0_72 = arith.constant 0 : index
      %c0_73 = arith.constant 0 : index
      %161 = vector.load %arg10[%c0_72, %c0_73] : memref<8x128xf32, #tpu.memory_space<vmem>>, vector<8x128xf32>
      %c0_74 = arith.constant 0 : index
      %c0_75 = arith.constant 0 : index
      %162 = vector.load %arg8[%c0_74, %c0_75] : memref<8x128xf32, #tpu.memory_space<vmem>>, vector<8x128xf32>
      tpu.vector_store %arg8[%c0_74, %c0_75], %161 {strides = array<i32>} : memref<8x128xf32, #tpu.memory_space<vmem>>, vector<8x128xf32>,
    } else {
    }
    return
  }
  func.func @transform_0(%arg0: i32, %arg1: i32) -> (i32, i32, i32) {
    %c0_i32 = arith.constant 0 : i32
    %c0_i32_0 = arith.constant 0 : i32
    return %arg1, %arg0, %c0_i32 : i32, i32, i32
  }
  func.func @transform_1(%arg0: i32, %arg1: i32) -> (i32, i32) {
    %c0_i32 = arith.constant 0 : i32
    %c0_i32_0 = arith.constant 0 : i32
    %c0_i32_1 = arith.constant 0 : i32
    return %c0_i32, %c0_i32_0 : i32, i32
  }
  func.func @transform_2(%arg0: i32, %arg1: i32) -> (i32, i32) {
    %c0_i32 = arith.constant 0 : i32
    %c0_i32_0 = arith.constant 0 : i32
    return %arg0, %c0_i32 : i32, i32
  }
  func.func @transform_3(%arg0: i32, %arg1: i32) -> (i32, i32) {
    %c0_i32 = arith.constant 0 : i32
    %c0_i32_0 = arith.constant 0 : i32
    return %arg0, %c0_i32 : i32, i32
  }
  func.func @transform_4(%arg0: i32, %arg1: i32) -> (i32, i32, i32) {
    %c0_i32 = arith.constant 0 : i32
    %c0_i32_0 = arith.constant 0 : i32
    return %arg1, %arg0, %c0_i32 : i32, i32, i32
  }
  func.func @transform_5(%arg0: i32, %arg1: i32) -> (i32, i32) {
    %c0_i32 = arith.constant 0 : i32
    %c0_i32_0 = arith.constant 0 : i32
    return %arg0, %c0_i32 : i32, i32
  }
  func.func @transform_6(%arg0: i32, %arg1: i32) -> (i32, i32) {
    %c0_i32 = arith.constant 0 : i32
    %c0_i32_0 = arith.constant 0 : i32
    return %arg0, %c0_i32 : i32, i32
  }
}

</mosaic_0001>

<bundles_post_ra>
// kernel: lstm_forward.2
= control target key start
LH: loop header
LB: loop body
LE: loop exit
PB: predicated region body
PF: predicated region fallthrough
CT: control target
= control target key end

     0   :  { %s693_s12 = smov 0   ;;  %s695_s13 = smov 0   ;;  %s783_s0 = inlined_call_operand.vmem [shape: f32[64,16], index: 0, kind: input, shape index: {}]   ;;  %s784_s1 = inlined_call_operand.vmem [shape: f32[16,512], index: 1, kind: input, shape index: {}]   ;;  %s785_s2 = inlined_call_operand.vmem [shape: f32[1,512], index: 2, kind: input, shape index: {}]   ;;  %s786_s3 = inlined_call_operand.vmem [shape: f32[64,512], index: 3, kind: output, shape index: {}]  }
   0x1   :  { %s697_s14 = smov 0  }
   0x2 LB: > { %s25_s15 = sadd.s32 1, %s666_s13  ;;  %p598_p0 = scmp.ge.s32.totalorder %s670_s14, 1  ;;  %s670_s14 = sphi %s697_s14, %s13_s14   ;;  %s666_s13 = sphi %s695_s13, %s788_s13   ;;  %s662_s12 = sphi %s693_s12, %s787_s12  }
   0x3   : > { %p27_p1 = scmp.ge.s32.totalorder %s25_s15, 2  ;;  %p173_p2 = scmp.lt.s32.totalorder %s670_s14, 3 }
   0x5   : > { %s790_s15 = smov (%p27_p1, %s25_s15), 0  ;;  %p174_p3 = pnand %p598_p0, %p173_p2 }
   0x6   : > { %v245_v0 = vld [vmem:[%s784_s1 + $0x8] sm:$0xff] (!%p174_p3)  ;;  %v247_v2 = vld [vmem:[%s784_s1 + $0x18] sm:$0xff] (!%p174_p3)  ;;  %s599_s22 = sshll.u32 (!%p174_p3), %s662_s12, 2  ;;  %v244_v5 = vld [vmem:[%s784_s1] sm:$0xff] (!%p174_p3)  ;;  %v672_v7 = vmov (!%p174_p3), 0.0   ;;  %vm274_vm0 = vcmask (!%p174_p3), 130048   ;;  %v254_v17 = vlaneseq (!%p174_p3) }
   0x7   : > { %177 = sbr.rel (%p174_p3) target bundleno = 246 (0xf6), region = 32  ;;  %v249_v1 = vld [vmem:[%s784_s1 + $0x28] sm:$0xff] (!%p174_p3)  ;;  %v251_v4 = vld [vmem:[%s784_s1 + $0x38] sm:$0xff] (!%p174_p3)  ;;  %v248_v6 = vld [vmem:[%s784_s1 + $0x20] sm:$0xff] (!%p174_p3)  ;;  %351 = vmatprep.mubr.f32.mxu0 (!%p174_p3), %v672_v7  ;;  %440 = vmatprep.mubr.f32.mxu1 (!%p174_p3), %v672_v7  ;;  %p212_p4 = scmp.lt.s32.totalorder (!%p174_p3), %s599_s22, 7 }
   0x8   : > { %v615_v3 = vpack.c.bf16 (!%p174_p3), %v249_v1, %v245_v0  ;;  %v619_v8 = vpack.c.bf16 (!%p174_p3), %v251_v4, %v247_v2  ;;  %v617_v9 = vpack.c.bf16 (!%p174_p3), %v248_v6, %v244_v5  ;;  %v246_v10 = vld [vmem:[%s784_s1 + $0x10] sm:$0xff] (!%p174_p3)  ;;  %v255_v18 = vshrl.u32 (!%p174_p3), %v254_v17, 7  ;;  %v252_v21 = vld [vmem:[%s785_s2] sm:$0xf] (!%p174_p3) }
   0x9   : > { %v250_v11 = vld [vmem:[%s784_s1 + $0x30] sm:$0xff] (!%p174_p3) }
   0xa   : > { %616 = vmatprep.subr.bf16.mxu0 (!%p174_p3), %v615_v3  ;;  %v621_v12 = vpack.c.bf16 (!%p174_p3), %v250_v11, %v246_v10  ;;  %620 = vmatprep.subr.bf16.mxu1 (!%p174_p3), %v619_v8  ;;  %v256_v19 = vsub.s32 (!%p174_p3), 0, %v255_v18  ;;  %v264_v20 = vsub.s32 (!%p174_p3), 2, %v255_v18  ;;  %v260_v22 = vsub.s32 (!%p174_p3), 1, %v255_v18 }
   0xb   : > { %618 = vmatpush1.bf16.msra.mxu0 (!%p174_p3), %v617_v9  ;;  %v268_v23 = vsub.s32 (!%p174_p3), 3, %v255_v18 }
   0xc   : > { %622 = vmatpush1.bf16.msra.mxu1 (!%p174_p3), %v621_v12  ;;  %v257_v24 = vrot.slane (!%p174_p3), %v252_v21, %v256_v19  ;;  %v265_v25 = vrot.slane (!%p174_p3), %v252_v21, %v264_v20  ;;  %v261_v26 = vrot.slane (!%p174_p3), %v252_v21, %v260_v22 }
   0xd   : > { %v269_v27 = vrot.slane (!%p174_p3), %v252_v21, %v268_v23 }
   0xe   : > { %s792_s22 = smov (!%p212_p4, %s599_s22), 7 }
   0xf   : > { %s600_s6 = sshll.u32 %s792_s22, 3  ;;  %s614_s12 = sshll.u32 %s792_s22, 5 }
  0x10   : > { %s215_s9 = scalar_lea.vmem %s783_s0, %s600_s6  ;;  %s756_s18 = scalar_lea.vmem %s786_s3, %s614_s12 }
  0x11   : > { %v240_v13 = vld [vmem:[%s215_s9] sm:$0xff]  ;;  %v241_v14 = vld [vmem:[%s215_s9 + $0x8] sm:$0xff]  ;;  %v242_v15 = vld [vmem:[%s215_s9 + $0x10] sm:$0xff] }
  0x12   : > { %604 = vmatmul.mubr.msk.f32.vlgmr.msra.gmra.mrb[0].mxu0 %vm274_vm0, %v240_v13  ;;  %608 = vmatmul.mubr.msk.f32.vlgmr.msra.gmra.mrb[0].mxu1 %vm274_vm0, %v240_v13  ;;  %v243_v16 = vld [vmem:[%s215_s9 + $0x18] sm:$0xff] }
  0x13   : > { %357 = vmatprep.mubr.f32.mxu0 %v672_v7  ;;  %446 = vmatprep.mubr.f32.mxu1 %v672_v7 }
  0x16   : > { %605 = vmatmul.mubr.msk.f32.gmra.mrb[2].mxu0 %vm274_vm0, %v241_v14  ;;  %609 = vmatmul.mubr.msk.f32.gmra.mrb[2].mxu1 %vm274_vm0, %v241_v14 }
  0x17   : > { %363 = vmatprep.mubr.f32.mxu0 %v672_v7  ;;  %452 = vmatprep.mubr.f32.mxu1 %v672_v7 }
  0x1a   : > { %606 = vmatmul.mubr.msk.f32.gmra.mrb[4].mxu0 %vm274_vm0, %v242_v15  ;;  %610 = vmatmul.mubr.msk.f32.gmra.mrb[4].mxu1 %vm274_vm0, %v242_v15 }
  0x1b   : > { %369 = vmatprep.mubr.f32.mxu0 %v672_v7  ;;  %458 = vmatprep.mubr.f32.mxu1 %v672_v7 }
  0x1e   : > { %607 = vmatmul.mubr.msk.f32.gmra.mrb[6].mxu0 %vm274_vm0, %v243_v16  ;;  %611 = vmatmul.mubr.msk.f32.gmra.mrb[6].mxu1 %vm274_vm0, %v243_v16 }
  0xe5   : > { %v353_v28 = vpop.f32.mrb[0].mxu0  ;;  %v442_v29 = vpop.f32.mrb[0].mxu1 }
  0xe6   : > { %v354_v30 = vadd.f32 %v353_v28, %v257_v24  ;;  %v443_v31 = vadd.f32 %v442_v29, %v265_v25  ;;  %v355_v32 = vpop.f32.mrb[1].mxu0  ;;  %v444_v33 = vpop.f32.mrb[1].mxu1 }
  0xe7   : > { %v356_v34 = vadd.f32 %v355_v32, %v261_v26  ;;  %v445_v35 = vadd.f32 %v444_v33, %v269_v27 }
  0xe8   : > { %465 = vst [vmem:[%s756_s18] sm:$0xff] %v354_v30  ;;  %467 = vst [vmem:[%s756_s18 + $0x10] sm:$0xff] %v443_v31 }
  0xe9   : > { %466 = vst [vmem:[%s756_s18 + $0x8] sm:$0xff] %v356_v34  ;;  %468 = vst [vmem:[%s756_s18 + $0x18] sm:$0xff] %v445_v35  ;;  %v359_v36 = vpop.f32.mrb[2].mxu0  ;;  %v448_v37 = vpop.f32.mrb[2].mxu1 }
  0xea   : > { %v360_v38 = vadd.f32 %v359_v36, %v257_v24  ;;  %v449_v39 = vadd.f32 %v448_v37, %v265_v25  ;;  %v361_v40 = vpop.f32.mrb[3].mxu0  ;;  %v450_v41 = vpop.f32.mrb[3].mxu1 }
  0xeb   : > { %v362_v42 = vadd.f32 %v361_v40, %v261_v26  ;;  %v451_v43 = vadd.f32 %v450_v41, %v269_v27 }
  0xec   : > { %469 = vst [vmem:[%s756_s18 + $0x20] sm:$0xff] %v360_v38  ;;  %471 = vst [vmem:[%s756_s18 + $0x30] sm:$0xff] %v449_v39 }
  0xed   : > { %470 = vst [vmem:[%s756_s18 + $0x28] sm:$0xff] %v362_v42  ;;  %472 = vst [vmem:[%s756_s18 + $0x38] sm:$0xff] %v451_v43  ;;  %v365_v44 = vpop.f32.mrb[4].mxu0  ;;  %v454_v45 = vpop.f32.mrb[4].mxu1 }
  0xee   : > { %v366_v46 = vadd.f32 %v365_v44, %v257_v24  ;;  %v455_v47 = vadd.f32 %v454_v45, %v265_v25  ;;  %v367_v48 = vpop.f32.mrb[5].mxu0  ;;  %v456_v49 = vpop.f32.mrb[5].mxu1 }
  0xef   : > { %v368_v50 = vadd.f32 %v367_v48, %v261_v26  ;;  %v457_v51 = vadd.f32 %v456_v49, %v269_v27 }
  0xf0   : > { %473 = vst [vmem:[%s756_s18 + $0x40] sm:$0xff] %v366_v46  ;;  %475 = vst [vmem:[%s756_s18 + $0x50] sm:$0xff] %v455_v47 }
  0xf1   : > { %474 = vst [vmem:[%s756_s18 + $0x48] sm:$0xff] %v368_v50  ;;  %476 = vst [vmem:[%s756_s18 + $0x58] sm:$0xff] %v457_v51  ;;  %v371_v52 = vpop.f32.mrb[6].mxu0  ;;  %v460_v53 = vpop.f32.mrb[6].mxu1 }
  0xf2   : > { %v372_v54 = vadd.f32 %v371_v52, %v257_v24  ;;  %v461_v55 = vadd.f32 %v460_v53, %v265_v25  ;;  %v373_v56 = vpop.f32.mrb[7].mxu0  ;;  %v462_v57 = vpop.f32.mrb[7].mxu1 }
  0xf3   : > { %v374_v58 = vadd.f32 %v373_v56, %v261_v26  ;;  %v463_v59 = vadd.f32 %v462_v57, %v269_v27 }
  0xf4   : > { %477 = vst [vmem:[%s756_s18 + $0x60] sm:$0xff] %v372_v54  ;;  %479 = vst [vmem:[%s756_s18 + $0x70] sm:$0xff] %v461_v55 }
  0xf5   : > { %478 = vst [vmem:[%s756_s18 + $0x68] sm:$0xff] %v374_v58  ;;  %480 = vst [vmem:[%s756_s18 + $0x78] sm:$0xff] %v463_v59 }
  0xf6 PF: > { %s13_s14 = sadd.s32 1, %s670_s14   ;;  %s787_s12 = smov %s666_s13 }
  0xf7   : > { %p10_p5 = scmp.ge.s32.totalorder %s13_s14, 4   ;;  %s788_s13 = smov %s790_s15 }
  0xf9   :  { %12 = sbr.rel (!%p10_p5) target bundleno = 2 (0x2), region = 68 }

// kernel: lstm_forward.3
= control target key start
LH: loop header
LB: loop body
LE: loop exit
PB: predicated region body
PF: predicated region fallthrough
CT: control target
= control target key end

     0   :  { %s1770_s21 = smov 0   ;;  %s1772_s22 = smov 0   ;;  %s2244_s0 = inlined_call_operand.vmem [shape: f32[8,8,512], index: 0, kind: input, shape index: {}]   ;;  %s2245_s1 = inlined_call_operand.vmem [shape: f32[128,512], index: 1, kind: input, shape index: {}]   ;;  %s2246_s2 = inlined_call_operand.vmem [shape: f32[8,128], index: 2, kind: input, shape index: {}, may-alias: {2,3}]   ;;  %s2247_s3 = inlined_call_operand.vmem [shape: f32[8,128], index: 3, kind: input, shape index: {}, may-alias: {2,3}]   ;;  %s2248_s4 = inlined_call_operand.vmem [shape: f32[8,8,128], index: 4, kind: output, shape index: {0}]   ;;  %s2249_s5 = inlined_call_operand.vmem [shape: f32[8,128], index: 5, kind: output, shape index: {1}]   ;;  %s2250_s6 = inlined_call_operand.vmem [shape: f32[8,128], index: 6, kind: output, shape index: {2}]  }
   0x1   :  { %s1774_s23 = smov 0  }
   0x2 LB: > { %s26_s24 = sadd.s32 1, %s1728_s22  ;;  %p1325_p0 = scmp.ge.s32.totalorder %s1732_s23, 1  ;;  %s1732_s23 = sphi %s1774_s23, %s17_s23   ;;  %s1728_s22 = sphi %s1772_s22, %s2252_s22   ;;  %s1724_s21 = sphi %s1770_s21, %s2251_s21  }
   0x3   : > { %p27_p1 = scmp.ge.s32.totalorder %s26_s24, 2  ;;  %p257_p2 = scmp.lt.s32.totalorder %s1732_s23, 3 }
   0x5   : > { %s2254_s24 = smov (%p27_p1, %s26_s24), 0  ;;  %p258_p3 = pnand %p1325_p0, %p257_p2 }
   0x6   : > { %s1326_s25 = sshll.u32 (!%p258_p3), %s1724_s21, 2  ;;  %p1331_p5 = scmp.ne.s32.totalorder (!%p258_p3), %s1724_s21, 0 }
   0x7   : > { %261 = sbr.rel (%p258_p3) target bundleno = 1098 (0x44a), region = 36  ;;  %p312_p4 = scmp.lt.s32.totalorder (!%p258_p3), %s1326_s25, 7 }
   0xe   : > { %s2256_s25 = smov (!%p312_p4, %s1326_s25), 7  ;;  %350 = sbr.rel (%p1331_p5) target bundleno = 21 (0x15), region = 40 }
   0xf   : > { %s1364_s26 = sshll.u32 %s2256_s25, 5  ;;  %s1330_s27 = sshll.u32 %s2256_s25, 3  ;;  %v351_v0 = vld [vmem:[%s2246_s2] sm:$0xff] (!%p1331_p5) }
  0x10   : > { %s1794_s30 = scalar_lea.vmem %s2244_s0, %s1364_s26  ;;  %s1799_s9 = scalar_lea.vmem %s2248_s4, %s1330_s27  ;;  %v353_v1 = vld [vmem:[%s2247_s3] sm:$0xff] (!%p1331_p5)  ;;  %352 = vst [vmem:[#allocation2] sm:$0xff] (!%p1331_p5), %v351_v0 }
  0x11   : > { %354 = vst [vmem:[#allocation3] sm:$0xff] (!%p1331_p5), %v353_v1 }
  0x15 PF: > { %v356_v2 = vld [vmem:[%s2245_s1 + $0x8] sm:$0xff]  ;;  %v355_v4 = vld [vmem:[%s2245_s1] sm:$0xff]  ;;  %v1734_v9 = vmov 0.0   ;;  %v358_v21 = vld [vmem:[%s2245_s1 + $0x18] sm:$0xff]  ;;  %p1359_p6 = scmp.ne.s32.totalorder %s1724_s21, 1 }
  0x16   : > { %v360_v3 = vld [vmem:[%s2245_s1 + $0x28] sm:$0xff]  ;;  %v359_v6 = vld [vmem:[%s2245_s1 + $0x20] sm:$0xff]  ;;  %489 = vmatprep.mubr.f32.mxu0 %v1734_v9  ;;  %560 = vmatprep.mubr.f32.mxu1 %v1734_v9  ;;  %v362_v22 = vld [vmem:[%s2245_s1 + $0x38] sm:$0xff] }
  0x17   : > { %v1817_v5 = vpack.c.bf16 %v360_v3, %v356_v2  ;;  %v364_v7 = vld [vmem:[%s2245_s1 + $0x48] sm:$0xff]  ;;  %v1830_v10 = vpack.c.bf16 %v359_v6, %v355_v4  ;;  %v363_v12 = vld [vmem:[%s2245_s1 + $0x40] sm:$0xff]  ;;  %v1871_v24 = vpack.c.bf16 %v362_v22, %v358_v21  ;;  %v357_v25 = vld [vmem:[%s2245_s1 + $0x10] sm:$0xff] }
  0x18   : > { %v368_v8 = vld [vmem:[%s2245_s1 + $0x68] sm:$0xff]  ;;  %v367_v13 = vld [vmem:[%s2245_s1 + $0x60] sm:$0xff]  ;;  %v361_v26 = vld [vmem:[%s2245_s1 + $0x30] sm:$0xff] }
  0x19   : > { %v1832_v11 = vpack.c.bf16 %v368_v8, %v364_v7  ;;  %v372_v14 = vld [vmem:[%s2245_s1 + $0x88] sm:$0xff]  ;;  %1366 = vmatprep.subr.bf16.mxu0 %v1817_v5  ;;  %v1848_v16 = vpack.c.bf16 %v367_v13, %v363_v12  ;;  %v371_v17 = vld [vmem:[%s2245_s1 + $0x80] sm:$0xff]  ;;  %v1879_v27 = vpack.c.bf16 %v361_v26, %v357_v25  ;;  %1398 = vmatprep.subr.bf16.mxu1 %v1871_v24  ;;  %v366_v29 = vld [vmem:[%s2245_s1 + $0x58] sm:$0xff] }
  0x1a   : > { %v376_v15 = vld [vmem:[%s2245_s1 + $0xa8] sm:$0xff]  ;;  %1368 = vmatpush1.bf16.msra.mxu0 %v1830_v10  ;;  %v375_v18 = vld [vmem:[%s2245_s1 + $0xa0] sm:$0xff]  ;;  %v370_v30 = vld [vmem:[%s2245_s1 + $0x78] sm:$0xff] }
  0x1b   : > { %1370 = vmatprep.subr.bf16.mxu0 %v1832_v11  ;;  %v1857_v19 = vpack.c.bf16 %v376_v15, %v372_v14  ;;  %v380_v20 = vld [vmem:[%s2245_s1 + $0xc8] sm:$0xff]  ;;  %v1882_v28 = vpack.c.bf16 %v375_v18, %v371_v17  ;;  %v365_v31 = vld [vmem:[%s2245_s1 + $0x50] sm:$0xff]  ;;  %v379_v33 = vld [vmem:[%s2245_s1 + $0xc0] sm:$0xff]  ;;  %1400 = vmatpush1.bf16.msra.mxu1 %v1879_v27  ;;  %v1904_v35 = vpack.c.bf16 %v370_v30, %v366_v29 }
  0x1c   : > { %v384_v23 = vld [vmem:[%s2245_s1 + $0xe8] sm:$0xff]  ;;  %v383_v34 = vld [vmem:[%s2245_s1 + $0xe0] sm:$0xff]  ;;  %v369_v36 = vld [vmem:[%s2245_s1 + $0x70] sm:$0xff] }
  0x1d   : > { %v1895_v32 = vpack.c.bf16 %v384_v23, %v380_v20  ;;  %v388_v37 = vld [vmem:[%s2245_s1 + $0x108] sm:$0xff]  ;;  %v1915_v39 = vpack.c.bf16 %v369_v36, %v365_v31  ;;  %v374_v40 = vld [vmem:[%s2245_s1 + $0x98] sm:$0xff]  ;;  %1402 = vmatprep.subr.bf16.mxu1 %v1904_v35  ;;  %v373_v42 = vld [vmem:[%s2245_s1 + $0x90] sm:$0xff]  ;;  %v1931_v44 = vpack.c.bf16 %v383_v34, %v379_v33 }
  0x1e   : > { %1372 = vmatpush1.bf16.msra.mxu0 %v1848_v16  ;;  %v392_v38 = vld [vmem:[%s2245_s1 + $0x128] sm:$0xff]  ;;  %v378_v41 = vld [vmem:[%s2245_s1 + $0xb8] sm:$0xff]  ;;  %v377_v43 = vld [vmem:[%s2245_s1 + $0xb0] sm:$0xff] }
  0x1f   : > { %1374 = vmatprep.subr.bf16.mxu0 %v1857_v19  ;;  %v387_v45 = vld [vmem:[%s2245_s1 + $0x100] sm:$0xff]  ;;  %v1939_v47 = vpack.c.bf16 %v378_v41, %v374_v40  ;;  %v1942_v48 = vpack.c.bf16 %v392_v38, %v388_v37  ;;  %1404 = vmatpush1.bf16.msra.mxu1 %v1915_v39  ;;  %v396_v49 = vld [vmem:[%s2245_s1 + $0x148] sm:$0xff]  ;;  %v1948_v50 = vpack.c.bf16 %v377_v43, %v373_v42  ;;  %v382_v51 = vld [vmem:[%s2245_s1 + $0xd8] sm:$0xff] }
  0x20   : > { %v391_v46 = vld [vmem:[%s2245_s1 + $0x120] sm:$0xff]  ;;  %v386_v52 = vld [vmem:[%s2245_s1 + $0xf8] sm:$0xff]  ;;  %v400_v53 = vld [vmem:[%s2245_s1 + $0x168] sm:$0xff] }
  0x21   : > { %1406 = vmatprep.subr.bf16.mxu1 %v1939_v47  ;;  %v1960_v54 = vpack.c.bf16 %v386_v52, %v382_v51  ;;  %v381_v55 = vld [vmem:[%s2245_s1 + $0xd0] sm:$0xff]  ;;  %v1969_v57 = vpack.c.bf16 %v391_v46, %v387_v45  ;;  %v390_v58 = vld [vmem:[%s2245_s1 + $0x118] sm:$0xff]  ;;  %v1978_v60 = vpack.c.bf16 %v400_v53, %v396_v49  ;;  %v395_v61 = vld [vmem:[%s2245_s1 + $0x140] sm:$0xff] }
  0x22   : > { %1376 = vmatpush1.bf16.msra.mxu0 %v1882_v28  ;;  %v385_v56 = vld [vmem:[%s2245_s1 + $0xf0] sm:$0xff]  ;;  %v394_v59 = vld [vmem:[%s2245_s1 + $0x138] sm:$0xff]  ;;  %v399_v62 = vld [vmem:[%s2245_s1 + $0x160] sm:$0xff] }
  0x23   : > { %1378 = vmatprep.subr.bf16.mxu0 %v1895_v32  ;;  %1408 = vmatpush1.bf16.msra.mxu1 %v1948_v50  ;;  %v404_v63 = vld [vmem:[%s2245_s1 + $0x188] sm:$0xff]  ;;  %v1990_v0 = vpack.c.bf16 %v385_v56, %v381_v55  ;;  %v1996_v2 = vpack.c.bf16 %v394_v59, %v390_v58  ;;  %v389_v3 = vld [vmem:[%s2245_s1 + $0x110] sm:$0xff]  ;;  %v398_v6 = vld [vmem:[%s2245_s1 + $0x158] sm:$0xff]  ;;  %v2011_v8 = vpack.c.bf16 %v399_v62, %v395_v61 }
  0x24   : > { %v408_v1 = vld [vmem:[%s2245_s1 + $0x1a8] sm:$0xff]  ;;  %1410 = vmatprep.subr.bf16.mxu1 %v1960_v54  ;;  %v393_v4 = vld [vmem:[%s2245_s1 + $0x130] sm:$0xff]  ;;  %v402_v7 = vld [vmem:[%s2245_s1 + $0x178] sm:$0xff] }
  0x25   : > { %v2014_v12 = vpack.c.bf16 %v408_v1, %v404_v63  ;;  %v403_v13 = vld [vmem:[%s2245_s1 + $0x180] sm:$0xff]  ;;  %v412_v15 = vld [vmem:[%s2245_s1 + $0x1c8] sm:$0xff]  ;;  %v2026_v17 = vpack.c.bf16 %v393_v4, %v389_v3  ;;  %v2032_v20 = vpack.c.bf16 %v402_v7, %v398_v6  ;;  %v397_v21 = vld [vmem:[%s2245_s1 + $0x150] sm:$0xff] }
  0x26   : > { %1380 = vmatpush1.bf16.msra.mxu0 %v1931_v44  ;;  %v407_v14 = vld [vmem:[%s2245_s1 + $0x1a0] sm:$0xff]  ;;  %v416_v18 = vld [vmem:[%s2245_s1 + $0x1e8] sm:$0xff]  ;;  %v401_v22 = vld [vmem:[%s2245_s1 + $0x170] sm:$0xff] }
  0x27   : > { %1382 = vmatprep.subr.bf16.mxu0 %v1942_v48  ;;  %1412 = vmatpush1.bf16.msra.mxu1 %v1990_v0  ;;  %v406_v23 = vld [vmem:[%s2245_s1 + $0x198] sm:$0xff]  ;;  %v2047_v26 = vpack.c.bf16 %v407_v14, %v403_v13  ;;  %v2050_v29 = vpack.c.bf16 %v416_v18, %v412_v15  ;;  %v411_v30 = vld [vmem:[%s2245_s1 + $0x1c0] sm:$0xff]  ;;  %v2059_v33 = vpack.c.bf16 %v401_v22, %v397_v21  ;;  %v405_v36 = vld [vmem:[%s2245_s1 + $0x190] sm:$0xff] }
  0x28   : > { %1414 = vmatprep.subr.bf16.mxu1 %v1996_v2  ;;  %v410_v25 = vld [vmem:[%s2245_s1 + $0x1b8] sm:$0xff]  ;;  %v415_v31 = vld [vmem:[%s2245_s1 + $0x1e0] sm:$0xff]  ;;  %v409_v37 = vld [vmem:[%s2245_s1 + $0x1b0] sm:$0xff] }
  0x29   : > { %v2062_v34 = vpack.c.bf16 %v410_v25, %v406_v23  ;;  %v414_v38 = vld [vmem:[%s2245_s1 + $0x1d8] sm:$0xff]  ;;  %v2077_v41 = vpack.c.bf16 %v415_v31, %v411_v30  ;;  %v2081_v42 = vpack.c.bf16 %v409_v37, %v405_v36  ;;  %v413_v45 = vld [vmem:[%s2245_s1 + $0x1d0] sm:$0xff]  ;;  %v423_v49 = vld [vmem:[#allocation2] sm:$0xff] }
  0x2a   : > { %1384 = vmatpush1.bf16.msra.mxu0 %v1969_v57  ;;  %v418_v40 = vld [vmem:[%s2245_s1 + $0x1f8] sm:$0xff]  ;;  %v417_v46 = vld [vmem:[%s2245_s1 + $0x1f0] sm:$0xff]  ;;  %v419_v52 = vld [vmem:[%s1794_s30] sm:$0xff] }
  0x2b   : > { %1386 = vmatprep.subr.bf16.mxu0 %v1978_v60  ;;  %1416 = vmatpush1.bf16.msra.mxu1 %v2026_v17  ;;  %v2084_v43 = vpack.c.bf16 %v418_v40, %v414_v38  ;;  %v2094_v51 = vpack.c.bf16 %v417_v46, %v413_v45  ;;  %v420_v53 = vld [vmem:[%s1794_s30 + $0x8] sm:$0xff]  ;;  %v422_v63 = vld [vmem:[%s1794_s30 + $0x18] sm:$0xff]  ;;  %v421_v6 = vld [vmem:[%s1794_s30 + $0x10] sm:$0xff] }
  0x2c   : > { %1418 = vmatprep.subr.bf16.mxu1 %v2032_v20  ;;  %v424_v25 = vld [vmem:[#allocation3] sm:$0xff] }
  0x2e   : > { %1388 = vmatpush1.bf16.msra.mxu0 %v2011_v8 }
  0x2f   : > { %1390 = vmatprep.subr.bf16.mxu0 %v2014_v12  ;;  %1420 = vmatpush1.bf16.msra.mxu1 %v2059_v33 }
  0x30   : > { %1422 = vmatprep.subr.bf16.mxu1 %v2062_v34 }
  0x32   : > { %1392 = vmatpush1.bf16.msra.mxu0 %v2047_v26 }
  0x33   : > { %1394 = vmatprep.subr.bf16.mxu0 %v2050_v29  ;;  %1424 = vmatpush1.bf16.msra.mxu1 %v2081_v42 }
  0x34   : > { %1426 = vmatprep.subr.bf16.mxu1 %v2084_v43 }
  0x36   : > { %1396 = vmatpush1.bf16.msra.mxu0 %v2077_v41 }
  0x37   : > { %1430 = vmatprep.subr.bf16.mxu0 %v1817_v5  ;;  %1428 = vmatpush1.bf16.msra.mxu1 %v2094_v51 }
  0x38   : > { %1462 = vmatprep.subr.bf16.mxu1 %v1871_v24 }
  0x39   : > { %490 = vmatmul.mubr.f32.vlgmr.msra.gmra.mrb[0].mxu0 %v423_v49 }
  0x3a   : > { %1432 = vmatpush1.bf16.msra.mxu0 %v1830_v10  ;;  %669 = vmatprep.mubr.f32.mxu0 %v1734_v9 }
  0x3b   : > { %1434 = vmatprep.subr.bf16.mxu0 %v1832_v11  ;;  %561 = vmatmul.mubr.f32.vlgmr.msra.gmra.mrb[0].mxu1 %v423_v49 }
  0x3c   : > { %1464 = vmatpush1.bf16.msra.mxu1 %v1879_v27  ;;  %740 = vmatprep.mubr.f32.mxu1 %v1734_v9 }
  0x3d   : > { %1466 = vmatprep.subr.bf16.mxu1 %v1904_v35 }
  0x3e   : > { %1436 = vmatpush1.bf16.msra.mxu0 %v1848_v16 }
  0x3f   : > { %1438 = vmatprep.subr.bf16.mxu0 %v1857_v19 }
  0x40   : > { %1468 = vmatpush1.bf16.msra.mxu1 %v1915_v39 }
  0x41   : > { %1470 = vmatprep.subr.bf16.mxu1 %v1939_v47 }
  0x42   : > { %1440 = vmatpush1.bf16.msra.mxu0 %v1882_v28 }
  0x43   : > { %1442 = vmatprep.subr.bf16.mxu0 %v1895_v32 }
  0x44   : > { %1472 = vmatpush1.bf16.msra.mxu1 %v1948_v50 }
  0x45   : > { %1474 = vmatprep.subr.bf16.mxu1 %v1960_v54 }
  0x46   : > { %1444 = vmatpush1.bf16.msra.mxu0 %v1931_v44 }
  0x47   : > { %1446 = vmatprep.subr.bf16.mxu0 %v1942_v48 }
  0x48   : > { %1476 = vmatpush1.bf16.msra.mxu1 %v1990_v0 }
  0x49   : > { %1478 = vmatprep.subr.bf16.mxu1 %v1996_v2 }
  0x4a   : > { %1448 = vmatpush1.bf16.msra.mxu0 %v1969_v57 }
  0x4b   : > { %1450 = vmatprep.subr.bf16.mxu0 %v1978_v60 }
  0x4c   : > { %1480 = vmatpush1.bf16.msra.mxu1 %v2026_v17 }
  0x4d   : > { %1482 = vmatprep.subr.bf16.mxu1 %v2032_v20 }
  0x4e   : > { %1452 = vmatpush1.bf16.msra.mxu0 %v2011_v8 }
  0x4f   : > { %1454 = vmatprep.subr.bf16.mxu0 %v2014_v12 }
  0x50   : > { %1484 = vmatpush1.bf16.msra.mxu1 %v2059_v33 }
  0x51   : > { %1486 = vmatprep.subr.bf16.mxu1 %v2062_v34 }
  0x52   : > { %1456 = vmatpush1.bf16.msra.mxu0 %v2047_v26 }
  0x53   : > { %1458 = vmatprep.subr.bf16.mxu0 %v2050_v29 }
  0x54   : > { %1488 = vmatpush1.bf16.msra.mxu1 %v2081_v42 }
  0x55   : > { %1490 = vmatprep.subr.bf16.mxu1 %v2084_v43 }
  0x56   : > { %1460 = vmatpush1.bf16.msra.mxu0 %v2077_v41 }
  0x57   : > { %1494 = vmatprep.subr.bf16.mxu0 %v1817_v5 }
  0x58   : > { %1492 = vmatpush1.bf16.msra.mxu1 %v2094_v51 }
  0x59   : > { %1526 = vmatprep.subr.bf16.mxu1 %v1871_v24 }
 0x10c   : > { %v491_v55 = vpop.f32.mrb[0].mxu0 }
 0x10d   : > { %v567_v56 = vadd.f32 %v491_v55, %v419_v52  ;;  %v493_v58 = vpop.f32.mrb[1].mxu0  ;;  %v1335_v52 = vld [vmem:[%s1794_s30 + $0x20] sm:$0xff] }
 0x10e   : > { %v568_v59 = vadd.f32 %v493_v58, %v420_v53  ;;  %v562_v1 = vpop.f32.mrb[0].mxu1  ;;  %v1336_v53 = vld [vmem:[%s1794_s30 + $0x28] sm:$0xff] }
 0x10f   : > { %v1332_v61 = vmul.f32 -1.442695, %v567_v56  ;;  %v564_v3 = vpop.f32.mrb[1].mxu1  ;;  %v569_v13 = vadd.f32 %v562_v1, %v421_v6  ;;  %v1337_v6 = vld [vmem:[%s1794_s30 + $0x30] sm:$0xff] }
 0x110   : > { %v1333_v62 = vmul.f32 -1.442695, %v568_v59  ;;  %v570_v4 = vadd.f32 %v564_v3, %v422_v63  ;;  %v1338_v3 = vld [vmem:[%s1794_s30 + $0x38] sm:$0xff] }
 0x111   : > { %1646 = vpow2.f32 %v1332_v61 }
 0x112   : > { %1648 = vpow2.f32 %v1333_v62  ;;  %v1334_v7 = vmul.f32 -1.442695, %v570_v4 }
 0x114   : > { %1650 = vpow2.f32 %v1334_v7 }
 0x115   : > { %1652 = vtanh.f32 %v569_v13 }
 0x11b   : > { %v1647_v14 = vpop.eup %1646 }
 0x11c   : > { %v1649_v15 = vpop.eup %1648  ;;  %v574_v18 = vadd.f32 1.0, %v1647_v14 }
 0x11d   : > { %v580_v21 = vadd.f32 1.0, %v1649_v15 }
 0x11e   : > { %1654 = vrcp.f32 %v574_v18  ;;  %v1651_v22 = vpop.eup %1650 }
 0x11f   : > { %1656 = vrcp.f32 %v580_v21  ;;  %v1653_v23 = vpop.eup %1652  ;;  %v587_v31 = vadd.f32 1.0, %v1651_v22 }
 0x121   : > { %1658 = vrcp.f32 %v587_v31 }
 0x128   : > { %v1655_v30 = vpop.eup %1654 }
 0x129   : > { %v1657_v36 = vpop.eup %1656  ;;  %v591_v37 = vmul.f32 %v1655_v30, %v1653_v23 }
 0x12a   : > { %v590_v38 = vmul.f32 %v1657_v36, %v424_v25 }
 0x12b   : > { %v1659_v45 = vpop.eup %1658 }
 0x12c   : > { %v2138_v40 = vadd.f32 %v591_v37, %v590_v38 }
 0x12e   : > { %1660 = vtanh.f32 %v2138_v40 }
 0x138   : > { %v1661_v46 = vpop.eup %1660 }
 0x139   : > { %v594_v49 = vmul.f32 %v1661_v46, %v1659_v45 }
 0x13b   : > { %597 = vst [vmem:[%s1799_s9] sm:$0xff] %v594_v49  ;;  %670 = vmatmul.mubr.f32.vlgmr.msra.gmra.mrb[2].mxu0 %v594_v49  ;;  %741 = vmatmul.mubr.f32.vlgmr.msra.gmra.mrb[2].mxu1 %v594_v49 }
 0x13c   : > { %1496 = vmatpush1.bf16.msra.mxu0 %v1830_v10  ;;  %1528 = vmatpush1.bf16.msra.mxu1 %v1879_v27 }
 0x13d   : > { %1498 = vmatprep.subr.bf16.mxu0 %v1832_v11  ;;  %1530 = vmatprep.subr.bf16.mxu1 %v1904_v35 }
 0x13e   : > { %850 = vmatprep.mubr.f32.mxu0 %v1734_v9  ;;  %921 = vmatprep.mubr.f32.mxu1 %v1734_v9 }
 0x140   : > { %1500 = vmatpush1.bf16.msra.mxu0 %v1848_v16  ;;  %1532 = vmatpush1.bf16.msra.mxu1 %v1915_v39 }
 0x141   : > { %1502 = vmatprep.subr.bf16.mxu0 %v1857_v19  ;;  %1534 = vmatprep.subr.bf16.mxu1 %v1939_v47 }
 0x144   : > { %1504 = vmatpush1.bf16.msra.mxu0 %v1882_v28  ;;  %1536 = vmatpush1.bf16.msra.mxu1 %v1948_v50 }
 0x145   : > { %1506 = vmatprep.subr.bf16.mxu0 %v1895_v32  ;;  %1538 = vmatprep.subr.bf16.mxu1 %v1960_v54 }
 0x148   : > { %1508 = vmatpush1.bf16.msra.mxu0 %v1931_v44  ;;  %1540 = vmatpush1.bf16.msra.mxu1 %v1990_v0 }
 0x149   : > { %1510 = vmatprep.subr.bf16.mxu0 %v1942_v48  ;;  %1542 = vmatprep.subr.bf16.mxu1 %v1996_v2 }
 0x14c   : > { %1512 = vmatpush1.bf16.msra.mxu0 %v1969_v57  ;;  %1544 = vmatpush1.bf16.msra.mxu1 %v2026_v17 }
 0x14d   : > { %1514 = vmatprep.subr.bf16.mxu0 %v1978_v60  ;;  %1546 = vmatprep.subr.bf16.mxu1 %v2032_v20 }
 0x150   : > { %1516 = vmatpush1.bf16.msra.mxu0 %v2011_v8  ;;  %1548 = vmatpush1.bf16.msra.mxu1 %v2059_v33 }
 0x151   : > { %1518 = vmatprep.subr.bf16.mxu0 %v2014_v12  ;;  %1550 = vmatprep.subr.bf16.mxu1 %v2062_v34 }
 0x154   : > { %1520 = vmatpush1.bf16.msra.mxu0 %v2047_v26  ;;  %1552 = vmatpush1.bf16.msra.mxu1 %v2081_v42 }
 0x155   : > { %1522 = vmatprep.subr.bf16.mxu0 %v2050_v29  ;;  %1554 = vmatprep.subr.bf16.mxu1 %v2084_v43 }
 0x158   : > { %1524 = vmatpush1.bf16.msra.mxu0 %v2077_v41  ;;  %1556 = vmatpush1.bf16.msra.mxu1 %v2094_v51 }
 0x159   : > { %1558 = vmatprep.subr.bf16.mxu0 %v1817_v5  ;;  %1590 = vmatprep.subr.bf16.mxu1 %v1871_v24 }
 0x20e   : > { %v671_v55 = vpop.f32.mrb[2].mxu0  ;;  %v742_v56 = vpop.f32.mrb[2].mxu1 }
 0x20f   : > { %v747_v58 = vadd.f32 %v1335_v52, %v671_v55  ;;  %v673_v59 = vpop.f32.mrb[3].mxu0  ;;  %v744_v61 = vpop.f32.mrb[3].mxu1  ;;  %v749_v5 = vadd.f32 %v1337_v6, %v742_v56 }
 0x210   : > { %v748_v62 = vadd.f32 %v1336_v53, %v673_v59  ;;  %v750_v4 = vadd.f32 %v1338_v3, %v744_v61  ;;  %v1354_v61 = vld [vmem:[%s1794_s30 + $0x78] sm:$0xff] }
 0x211   : > { %v1339_v63 = vmul.f32 -1.442695, %v747_v58 }
 0x212   : > { %v1340_v1 = vmul.f32 -1.442695, %v748_v62  ;;  %v1341_v7 = vmul.f32 -1.442695, %v750_v4 }
 0x213   : > { %1662 = vpow2.f32 %v1339_v63  ;;  %v1353_v63 = vld [vmem:[%s1794_s30 + $0x70] sm:$0xff] }
 0x214   : > { %1664 = vpow2.f32 %v1340_v1 }
 0x215   : > { %1666 = vpow2.f32 %v1341_v7 }
 0x216   : > { %1668 = vtanh.f32 %v749_v5 }
 0x21d   : > { %v1663_v13 = vpop.eup %1662 }
 0x21e   : > { %v1665_v14 = vpop.eup %1664  ;;  %v754_v24 = vadd.f32 1.0, %v1663_v13 }
 0x21f   : > { %v760_v15 = vadd.f32 1.0, %v1665_v14  ;;  %v1667_v18 = vpop.eup %1666 }
 0x220   : > { %1670 = vrcp.f32 %v754_v24  ;;  %v1669_v21 = vpop.eup %1668  ;;  %v767_v30 = vadd.f32 1.0, %v1667_v18 }
 0x221   : > { %1672 = vrcp.f32 %v760_v15 }
 0x222   : > { %1674 = vrcp.f32 %v767_v30 }
 0x22a   : > { %v1671_v22 = vpop.eup %1670 }
 0x22b   : > { %v1673_v23 = vpop.eup %1672  ;;  %v771_v25 = vmul.f32 %v1671_v22, %v1669_v21 }
 0x22c   : > { %v770_v31 = vmul.f32 %v1673_v23, %v2138_v40  ;;  %v1675_v37 = vpop.eup %1674  ;;  %v1352_v40 = vld [vmem:[%s1794_s30 + $0x68] sm:$0xff] }
 0x22e   : > { %v2181_v36 = vadd.f32 %v771_v25, %v770_v31 }
 0x230   : > { %1676 = vtanh.f32 %v2181_v36 }
 0x23a   : > { %v1677_v38 = vpop.eup %1676 }
 0x23b   : > { %v774_v45 = vmul.f32 %v1677_v38, %v1675_v37 }
 0x23d   : > { %1342 = vst [vmem:[%s1799_s9 + $0x8] sm:$0xff] %v774_v45  ;;  %851 = vmatmul.mubr.f32.vlgmr.msra.gmra.mrb[4].mxu0 %v774_v45  ;;  %922 = vmatmul.mubr.f32.vlgmr.msra.gmra.mrb[4].mxu1 %v774_v45 }
 0x23e   : > { %1560 = vmatpush1.bf16.msra.mxu0 %v1830_v10  ;;  %1592 = vmatpush1.bf16.msra.mxu1 %v1879_v27  ;;  %v1344_v10 = vld [vmem:[%s1794_s30 + $0x48] sm:$0xff] }
 0x23f   : > { %1562 = vmatprep.subr.bf16.mxu0 %v1832_v11  ;;  %1594 = vmatprep.subr.bf16.mxu1 %v1904_v35 }
 0x240   : > { %1031 = vmatprep.mubr.f32.mxu0 %v1734_v9  ;;  %1102 = vmatprep.mubr.f32.mxu1 %v1734_v9  ;;  %v1343_v9 = vld [vmem:[%s1794_s30 + $0x40] sm:$0xff] }
 0x242   : > { %1564 = vmatpush1.bf16.msra.mxu0 %v1848_v16  ;;  %1596 = vmatpush1.bf16.msra.mxu1 %v1915_v39 }
 0x243   : > { %1566 = vmatprep.subr.bf16.mxu0 %v1857_v19  ;;  %1598 = vmatprep.subr.bf16.mxu1 %v1939_v47 }
 0x246   : > { %1568 = vmatpush1.bf16.msra.mxu0 %v1882_v28  ;;  %1600 = vmatpush1.bf16.msra.mxu1 %v1948_v50 }
 0x247   : > { %1570 = vmatprep.subr.bf16.mxu0 %v1895_v32  ;;  %1602 = vmatprep.subr.bf16.mxu1 %v1960_v54 }
 0x24a   : > { %1572 = vmatpush1.bf16.msra.mxu0 %v1931_v44  ;;  %1604 = vmatpush1.bf16.msra.mxu1 %v1990_v0  ;;  %v1346_v44 = vld [vmem:[%s1794_s30 + $0x58] sm:$0xff] }
 0x24b   : > { %1574 = vmatprep.subr.bf16.mxu0 %v1942_v48  ;;  %1606 = vmatprep.subr.bf16.mxu1 %v1996_v2  ;;  %v1345_v48 = vld [vmem:[%s1794_s30 + $0x50] sm:$0xff] }
 0x24e   : > { %1576 = vmatpush1.bf16.msra.mxu0 %v1969_v57  ;;  %1608 = vmatpush1.bf16.msra.mxu1 %v2026_v17 }
 0x24f   : > { %1578 = vmatprep.subr.bf16.mxu0 %v1978_v60  ;;  %1610 = vmatprep.subr.bf16.mxu1 %v2032_v20 }
 0x252   : > { %1580 = vmatpush1.bf16.msra.mxu0 %v2011_v8  ;;  %1612 = vmatpush1.bf16.msra.mxu1 %v2059_v33 }
 0x253   : > { %1582 = vmatprep.subr.bf16.mxu0 %v2014_v12  ;;  %1614 = vmatprep.subr.bf16.mxu1 %v2062_v34 }
 0x256   : > { %1584 = vmatpush1.bf16.msra.mxu0 %v2047_v26  ;;  %1616 = vmatpush1.bf16.msra.mxu1 %v2081_v42 }
 0x257   : > { %1586 = vmatprep.subr.bf16.mxu0 %v2050_v29  ;;  %1618 = vmatprep.subr.bf16.mxu1 %v2084_v43 }
 0x25a   : > { %1588 = vmatpush1.bf16.msra.mxu0 %v2077_v41  ;;  %1620 = vmatpush1.bf16.msra.mxu1 %v2094_v51  ;;  %v1351_v51 = vld [vmem:[%s1794_s30 + $0x60] sm:$0xff] }
 0x310   : > { %v852_v11 = vpop.f32.mrb[4].mxu0  ;;  %v923_v16 = vpop.f32.mrb[4].mxu1 }
 0x311   : > { %v928_v19 = vadd.f32 %v1343_v9, %v852_v11  ;;  %v854_v27 = vpop.f32.mrb[5].mxu0  ;;  %v925_v28 = vpop.f32.mrb[5].mxu1  ;;  %v930_v54 = vadd.f32 %v1345_v48, %v923_v16 }
 0x312   : > { %v929_v32 = vadd.f32 %v1344_v10, %v854_v27  ;;  %v931_v47 = vadd.f32 %v1346_v44, %v925_v28 }
 0x313   : > { %v1347_v35 = vmul.f32 -1.442695, %v928_v19 }
 0x314   : > { %v1348_v39 = vmul.f32 -1.442695, %v929_v32  ;;  %v1349_v50 = vmul.f32 -1.442695, %v931_v47 }
 0x315   : > { %1678 = vpow2.f32 %v1347_v35 }
 0x316   : > { %1680 = vpow2.f32 %v1348_v39 }
 0x317   : > { %1682 = vpow2.f32 %v1349_v50 }
 0x318   : > { %1684 = vtanh.f32 %v930_v54 }
 0x31f   : > { %v1679_v57 = vpop.eup %1678 }
 0x320   : > { %v1681_v60 = vpop.eup %1680  ;;  %v935_v0 = vadd.f32 1.0, %v1679_v57 }
 0x321   : > { %v941_v2 = vadd.f32 1.0, %v1681_v60  ;;  %v1683_v8 = vpop.eup %1682 }
 0x322   : > { %1686 = vrcp.f32 %v935_v0  ;;  %v1685_v12 = vpop.eup %1684  ;;  %v948_v29 = vadd.f32 1.0, %v1683_v8 }
 0x323   : > { %1688 = vrcp.f32 %v941_v2 }
 0x324   : > { %1690 = vrcp.f32 %v948_v29 }
 0x32c   : > { %v1687_v17 = vpop.eup %1686 }
 0x32d   : > { %v1689_v20 = vpop.eup %1688  ;;  %v952_v26 = vmul.f32 %v1687_v17, %v1685_v12 }
 0x32e   : > { %v951_v33 = vmul.f32 %v1689_v20, %v2181_v36  ;;  %v1691_v41 = vpop.eup %1690 }
 0x330   : > { %v953_v34 = vadd.f32 %v952_v26, %v951_v33 }
 0x332   : > { %1692 = vtanh.f32 %v953_v34 }
 0x33c   : > { %v1693_v42 = vpop.eup %1692 }
 0x33d   : > { %v955_v43 = vmul.f32 %v1693_v42, %v1691_v41 }
 0x33f   : > { %1350 = vst [vmem:[%s1799_s9 + $0x10] sm:$0xff] %v955_v43  ;;  %1032 = vmatmul.mubr.f32.vlgmr.msra.gmra.mrb[6].mxu0 %v955_v43  ;;  %1103 = vmatmul.mubr.f32.vlgmr.msra.gmra.mrb[6].mxu1 %v955_v43 }
 0x412   : > { %v1033_v46 = vpop.f32.mrb[6].mxu0  ;;  %v1104_v49 = vpop.f32.mrb[6].mxu1 }
 0x413   : > { %v1109_v52 = vadd.f32 %v1351_v51, %v1033_v46  ;;  %v1035_v53 = vpop.f32.mrb[7].mxu0  ;;  %v1106_v55 = vpop.f32.mrb[7].mxu1  ;;  %v1111_v3 = vadd.f32 %v1353_v63, %v1104_v49 }
 0x414   : > { %v1110_v56 = vadd.f32 %v1352_v40, %v1035_v53  ;;  %v1112_v62 = vadd.f32 %v1354_v61, %v1106_v55 }
 0x415   : > { %v1355_v58 = vmul.f32 -1.442695, %v1109_v52 }
 0x416   : > { %v1356_v59 = vmul.f32 -1.442695, %v1110_v56  ;;  %v1357_v1 = vmul.f32 -1.442695, %v1112_v62 }
 0x417   : > { %1694 = vpow2.f32 %v1355_v58 }
 0x418   : > { %1696 = vpow2.f32 %v1356_v59 }
 0x419   : > { %1698 = vpow2.f32 %v1357_v1 }
 0x41a   : > { %1700 = vtanh.f32 %v1111_v3 }
 0x421   : > { %v1695_v4 = vpop.eup %1694 }
 0x422   : > { %v1697_v6 = vpop.eup %1696  ;;  %v1116_v7 = vadd.f32 1.0, %v1695_v4 }
 0x423   : > { %v1122_v5 = vadd.f32 1.0, %v1697_v6  ;;  %v1699_v13 = vpop.eup %1698 }
 0x424   : > { %1702 = vrcp.f32 %v1116_v7  ;;  %v1701_v14 = vpop.eup %1700  ;;  %v1129_v21 = vadd.f32 1.0, %v1699_v13 }
 0x425   : > { %1704 = vrcp.f32 %v1122_v5 }
 0x426   : > { %1706 = vrcp.f32 %v1129_v21 }
 0x42e   : > { %v1703_v24 = vpop.eup %1702 }
 0x42f   : > { %v1705_v15 = vpop.eup %1704  ;;  %v1133_v18 = vmul.f32 %v1703_v24, %v1701_v14 }
 0x430   : > { %v1132_v22 = vmul.f32 %v1705_v15, %v953_v34  ;;  %v1707_v25 = vpop.eup %1706 }
 0x432   : > { %v1134_v23 = vadd.f32 %v1133_v18, %v1132_v22 }
 0x434   : > { %1708 = vtanh.f32 %v1134_v23  ;;  %1138 = vst [vmem:[#allocation3] sm:$0xff] %v1134_v23 }
 0x43b   : > { %1144 = sbr.rel (%p1359_p6) target bundleno = 1098 (0x44a), region = 44  ;;  %v1147_v37 = vld [vmem:[#allocation3] sm:$0xff] (!%p1359_p6) }
 0x43c   : > { %1148 = vst [vmem:[%s2250_s6] sm:$0xff] (!%p1359_p6), %v1147_v37 }
 0x43e   : > { %v1709_v30 = vpop.eup %1708 }
 0x43f   : > { %v1136_v31 = vmul.f32 %v1709_v30, %v1707_v25 }
 0x441   : > { %1137 = vst [vmem:[#allocation2] sm:$0xff] %v1136_v31  ;;  %1358 = vst [vmem:[%s1799_s9 + $0x18] sm:$0xff] %v1136_v31 }
 0x448   : > { %v1145_v36 = vld [vmem:[#allocation2] sm:$0xff] }
 0x449   : > { %1146 = vst [vmem:[%s2249_s5] sm:$0xff] %v1145_v36 }
 0x44a PF: > { %s17_s23 = sadd.s32 1, %s1732_s23   ;;  %s2251_s21 = smov %s1728_s22 }
 0x44b   : > { %p14_p7 = scmp.ge.s32.totalorder %s17_s23, 4   ;;  %s2252_s22 = smov %s2254_s24 }
 0x44d   :  { %16 = sbr.rel (!%p14_p7) target bundleno = 2 (0x2), region = 110 }

</bundles_post_ra>
